<compile_context>
chip_gen: v7x
topology: tpu7x:2x2x1
jax: 0.10.0
libtpu: 0.0.40
codegen_flags: <defaults>
</compile_context>

<pallas_src>
import math

import numpy as np
import jax
import jax.numpy as jnp
from jax.experimental import pallas as pl
from jax.experimental.pallas import tpu as pltpu  # noqa: F401  (kept for CompilerParams at scale)

# ----------------------------- config (small, synthetic) -----------------------------
BATCH = 2
SEQ = 8
HIDDEN = 32
INTERMEDIATE = 64
NUM_HEADS = 2
HEAD_DIM = HIDDEN // NUM_HEADS
NUM_EXPERTS = 4
TOP_K = 2                      # moe_type = "top2"
LN_EPS = 1e-7                  # DeBERTa-v2 default layer_norm_eps
N_TOKENS = BATCH * SEQ

EI = NUM_EXPERTS * INTERMEDIATE   # 256: fused expert first-layer output width (lane-dense)
EH = NUM_EXPERTS * HIDDEN         # 128: stacked expert-output width (lane-dense)
LOGITS_PAD = 128                  # lane-dense router logits / routing-prob width
OUT_PAD = 128                     # lane-dense layer-output width


# ----------------------------- in-kernel math helpers ---------------------------------
def _gelu_tanh(x):
    # tanh-form gelu: transcendental goes to the EUP slot instead of a VALU polynomial.
    c = 0.7978845608028654  # sqrt(2/pi)
    return 0.5 * x * (1.0 + jnp.tanh(c * (x + 0.044715 * x * x * x)))


def _layer_norm(y, gamma, beta):
    mu = jnp.mean(y, axis=-1, keepdims=True)
    var = jnp.mean((y - mu) ** 2, axis=-1, keepdims=True)
    return (y - mu) * jax.lax.rsqrt(var + LN_EPS) * gamma + beta


# ----------------------------- fused layer kernel -------------------------------------
def _fused_kernel(x_ref, fm_ref,
                  wq_ref, bq_ref, wk_ref, bk_ref, wv_ref, bv_ref,
                  wo_ref, bo_ref, ag_ref, ab_ref,
                  wr_ref, w1c_ref, b1c_ref, w2b_ref, b2c_ref, egc_ref, ebc_ref,
                  mmean_ref, expand_ref, sumstk_ref,
                  out_ref, logits_ref):
    x = x_ref[...]                                   # [N, H] f32 (flattened tokens)
    fm = fm_ref[...] > 0.0                           # [N, N] same-batch * q-mask * k-mask
    neg = float(jnp.finfo(jnp.float32).min)

    # ---- Q/K/V projections: three separate lane-aligned dots (scale folded into Wq/bq) ----
    q = jnp.dot(x, wq_ref[...], preferred_element_type=jnp.float32) + bq_ref[...]
    k = jnp.dot(x, wk_ref[...], preferred_element_type=jnp.float32) + bk_ref[...]
    v = jnp.dot(x, wv_ref[...], preferred_element_type=jnp.float32) + bv_ref[...]

    # ---- attention: per head, one [N,N] score matmul over ALL tokens; batches are kept
    #      separate by the block-diagonal mask. Context stays in vregs (no scratch).
    ctx_parts = []
    for h in range(NUM_HEADS):
        cols = slice(h * HEAD_DIM, (h + 1) * HEAD_DIM)
        qh, kh, vh = q[:, cols], k[:, cols], v[:, cols]
        s = jax.lax.dot_general(qh, kh, (((1,), (1,)), ((), ())),
                                preferred_element_type=jnp.float32)        # [N, N]
        s = jnp.where(fm, s, neg)                      # XSoftmax mask (incl. cross-batch)
        p = jax.nn.softmax(s, axis=-1)
        p = jnp.where(fm, p, 0.0)                      # zero masked probs (padded queries too)
        ctx_parts.append(jnp.dot(p, vh, preferred_element_type=jnp.float32))
    ctx = jnp.concatenate(ctx_parts, axis=1)           # [N, H]

    # ---- output dense + residual LayerNorm ----
    att = jnp.dot(ctx, wo_ref[...], preferred_element_type=jnp.float32) + bo_ref[...] + x
    att = _layer_norm(att, ag_ref[...], ab_ref[...])

    # ---- router: 128-lane-padded weight -> lane-dense logits output; routing math stays
    #      128-lane dense (padding lanes masked to -inf so softmax/top-k never pick them).
    logits_full = jnp.dot(att, wr_ref[...], preferred_element_type=jnp.float32)  # [N, 128]
    logits_ref[...] = logits_full
    lane = jax.lax.broadcasted_iota(jnp.int32, (N_TOKENS, LOGITS_PAD), 1)
    valid = lane < NUM_EXPERTS
    rprobs = jax.nn.softmax(jnp.where(valid, logits_full, neg), axis=-1)          # [N, 128]

    # top-k via iterative argmax (== torch.topk + renormalize; ties -> lowest index)
    remaining = rprobs
    selected = jnp.zeros_like(rprobs)
    for _ in range(TOP_K):
        mx = jnp.max(remaining, axis=-1, keepdims=True)
        is_max = remaining >= mx
        first = jnp.min(jnp.where(is_max, lane, LOGITS_PAD), axis=-1, keepdims=True)
        hit = lane == first
        selected = selected + jnp.where(hit, rprobs, 0.0)
        remaining = jnp.where(hit, -1.0, remaining)
    norm_w = selected / jnp.sum(selected, axis=-1, keepdims=True)                 # [N, 128]
    # expand each expert weight over its 32-lane output slab (single matmul, hoisted)
    wexp = jnp.dot(norm_w, expand_ref[...], preferred_element_type=jnp.float32)   # [N, E*H]

    # ---- experts: two fused matmuls, bf16 inputs / f32 accumulation ----
    # TODO(synk): at scale, route tokens (grouped matmul) instead of dense all-expert compute.
    att_bf = att.astype(jnp.bfloat16)
    inter = jnp.dot(att_bf, w1c_ref[...],
                    preferred_element_type=jnp.float32) + b1c_ref[...]            # [N, E*I]
    inter = _gelu_tanh(inter)
    out2 = jnp.dot(inter.astype(jnp.bfloat16), w2b_ref[...],
                   preferred_element_type=jnp.float32) + b2c_ref[...]             # [N, E*H]

    # per-expert residual + LayerNorm on the stacked lane-dense tile:
    # per-expert mean/var via block-diagonal averaging matmuls (MXU) instead of 4 serialized
    # cross-lane reductions; gamma/beta are concatenated to [1, E*H].
    y = out2 + jnp.concatenate([att] * NUM_EXPERTS, axis=1)                       # [N, E*H]
    mu = jnp.dot(y, mmean_ref[...], preferred_element_type=jnp.float32)
    d = y - mu
    var = jnp.dot(d * d, mmean_ref[...], preferred_element_type=jnp.float32)
    yn = d * jax.lax.rsqrt(var + LN_EPS) * egc_ref[...] + ebc_ref[...]            # [N, E*H]

    # routing mix + expert sum: one 0/1 "stack-sum" matmul, result padded to 128 lanes.
    out_ref[...] = jnp.dot(yn * wexp, sumstk_ref[...],
                           preferred_element_type=jnp.float32)                    # [N, 128]


# ----------------------------- parameter fusion for the kernel --------------------------
def prepare_kernel_params(p):
    scale = 1.0 / math.sqrt(HEAD_DIM)                  # DeBERTa: scale_factor = 1
    kp = {
        "wq": p["wq"] * scale, "bq": p["bq"] * scale,  # scale folded in once
        "wk": p["wk"], "bk": p["bk"],
        "wv": p["wv"], "bv": p["bv"],
        "wo": p["wo"], "bo": p["bo"], "ag": p["ag"], "ab": p["ab"],
        "wr_pad": jnp.pad(p["wr"], ((0, 0), (0, LOGITS_PAD - NUM_EXPERTS))),   # [H, 128]
    }

    # experts: fused first layer [H, E*I] and block-diagonal second layer [E*I, E*H]
    w1c = jnp.transpose(p["w1"], (1, 0, 2)).reshape(HIDDEN, EI)                # [H, E*I]
    b1c = p["b1"].reshape(1, EI)                                               # [1, E*I]
    w2b = jnp.zeros((EI, EH), jnp.float32)
    for e in range(NUM_EXPERTS):
        w2b = w2b.at[e * INTERMEDIATE:(e + 1) * INTERMEDIATE,
                     e * HIDDEN:(e + 1) * HIDDEN].set(p["w2"][e])
    kp["w1c"] = w1c.astype(jnp.bfloat16)
    kp["b1c"] = b1c
    kp["w2b"] = w2b.astype(jnp.bfloat16)
    kp["b2c"] = p["b2"].reshape(1, EH)
    kp["egc"] = p["eg"].reshape(1, EH)
    kp["ebc"] = p["eb"].reshape(1, EH)

    # constant block matrices for per-expert LayerNorm stats, routing-weight expansion,
    # and the final expert sum (pads the output to 128 lanes).
    mmean = np.zeros((EH, EH), np.float32)
    expand = np.zeros((LOGITS_PAD, EH), np.float32)
    sumstk = np.zeros((EH, OUT_PAD), np.float32)
    for e in range(NUM_EXPERTS):
        mmean[e * HIDDEN:(e + 1) * HIDDEN, e * HIDDEN:(e + 1) * HIDDEN] = 1.0 / HIDDEN
        expand[e, e * HIDDEN:(e + 1) * HIDDEN] = 1.0
        sumstk[e * HIDDEN:(e + 1) * HIDDEN, :HIDDEN] = np.eye(HIDDEN, dtype=np.float32)
    kp["mmean"] = jnp.asarray(mmean)
    kp["expand"] = jnp.asarray(expand)
    kp["sumstk"] = jnp.asarray(sumstk)
    return kp


# ----------------------------- full layer wrapper ---------------------------------------
def deberta_v2_moe_layer(hidden_states, attention_mask, params):
    B, S, H = hidden_states.shape
    N = B * S
    kp = prepare_kernel_params(params)

    x_flat = hidden_states.reshape(N, H)

    # block-diagonal (same-batch) x query-mask x key-mask pairwise mask, O(N^2)=1KB here
    mflat = attention_mask.reshape(N)
    bid = jnp.repeat(jnp.arange(B), S)
    same = (bid[:, None] == bid[None, :]).astype(jnp.float32)
    fullmask = same * mflat[:, None] * mflat[None, :]                          # [N, N]

    out_pad, logits_pad = pl.pallas_call(
        _fused_kernel,
        out_shape=(jax.ShapeDtypeStruct((N, OUT_PAD), jnp.float32),
                   jax.ShapeDtypeStruct((N, LOGITS_PAD), jnp.float32)),
    )(x_flat, fullmask,
      kp["wq"], kp["bq"], kp["wk"], kp["bk"], kp["wv"], kp["bv"],
      kp["wo"], kp["bo"], kp["ag"], kp["ab"],
      kp["wr_pad"], kp["w1c"], kp["b1c"], kp["w2b"], kp["b2c"], kp["egc"], kp["ebc"],
      kp["mmean"], kp["expand"], kp["sumstk"])

    layer_out = out_pad[:, :H].reshape(B, S, H)
    router_logits = logits_pad[:, :NUM_EXPERTS]
    return layer_out, router_logits


# ----------------------------- pure-JAX reference (mirrors torch semantics) -------------
def _ref_gelu(x):
    return 0.5 * x * (1.0 + jax.scipy.special.erf(x / math.sqrt(2.0)))


def _ref_ln(y, g, b):
    mu = jnp.mean(y, axis=-1, keepdims=True)
    var = jnp.mean((y - mu) ** 2, axis=-1, keepdims=True)
    return (y - mu) / jnp.sqrt(var + LN_EPS) * g + b


def reference_forward(x, attention_mask, p):
    B, S, H = x.shape
    m3 = attention_mask[:, :, None] * attention_mask[:, None, :]
    q = x @ p["wq"] + p["bq"]
    k = x @ p["wk"] + p["bk"]
    v = x @ p["wv"] + p["bv"]
    split = lambda t: t.reshape(B, S, NUM_HEADS, HEAD_DIM).transpose(0, 2, 1, 3)
    qh, kh, vh = split(q), split(k), split(v)
    scores = jnp.einsum("bhqd,bhkd->bhqk", qh, kh) / math.sqrt(HEAD_DIM)
    mm = m3[:, None]
    scores = jnp.where(mm > 0, scores, jnp.finfo(jnp.float32).min)
    probs = jax.nn.softmax(scores, axis=-1)
    probs = jnp.where(mm > 0, probs, 0.0)
    ctx = jnp.einsum("bhqk,bhkd->bhqd", probs, vh).transpose(0, 2, 1, 3).reshape(B, S, H)
    att_out = _ref_ln(ctx @ p["wo"] + p["bo"] + x, p["ag"], p["ab"])

    flat = att_out.reshape(B * S, H)
    logits = flat @ p["wr"]
    rp = jax.nn.softmax(logits, axis=-1)
    vals, idx = jax.lax.top_k(rp, TOP_K)
    vals = vals / jnp.sum(vals, axis=-1, keepdims=True)
    w_full = jnp.zeros_like(rp)
    for kk in range(TOP_K):
        w_full = w_full + jax.nn.one_hot(idx[:, kk], NUM_EXPERTS) * vals[:, kk:kk + 1]
    out = jnp.zeros_like(flat)
    for e in range(NUM_EXPERTS):
        inter = _ref_gelu(flat @ p["w1"][e] + p["b1"][e])
        o = inter @ p["w2"][e] + p["b2"][e]
        expert_out = _ref_ln(o + flat, p["eg"][e], p["eb"][e])
        out = out + w_full[:, e:e + 1] * expert_out
    return out.reshape(B, S, H), logits


# ----------------------------- parameter init -------------------------------------------
def init_params(key):
    def nrm(k, shape, scale=0.05):
        return (jax.random.normal(k, shape, jnp.float32) * scale).astype(jnp.float32)

    ks = jax.random.split(key, 16)
    p = {
        "wq": nrm(ks[0], (HIDDEN, HIDDEN)), "bq": nrm(ks[1], (1, HIDDEN)),
        "wk": nrm(ks[2], (HIDDEN, HIDDEN)), "bk": nrm(ks[3], (1, HIDDEN)),
        "wv": nrm(ks[4], (HIDDEN, HIDDEN)), "bv": nrm(ks[5], (1, HIDDEN)),
        "wo": nrm(ks[6], (HIDDEN, HIDDEN)), "bo": nrm(ks[7], (1, HIDDEN)),
        "ag": jnp.ones((1, HIDDEN), jnp.float32), "ab": jnp.zeros((1, HIDDEN), jnp.float32),
        "wr": nrm(ks[8], (HIDDEN, NUM_EXPERTS), scale=0.5),
        "w1": nrm(ks[9], (NUM_EXPERTS, HIDDEN, INTERMEDIATE)),
        "b1": nrm(ks[10], (NUM_EXPERTS, 1, INTERMEDIATE)),
        "w2": nrm(ks[11], (NUM_EXPERTS, INTERMEDIATE, HIDDEN)),
        "b2": nrm(ks[12], (NUM_EXPERTS, 1, HIDDEN)),
        "eg": jnp.ones((NUM_EXPERTS, 1, HIDDEN), jnp.float32),
        "eb": jnp.zeros((NUM_EXPERTS, 1, HIDDEN), jnp.float32),
    }
    return p


# ----------------------------- main -------------------------------------------------------
if __name__ == "__main__":
    key = jax.random.PRNGKey(0)
    kx, kparam = jax.random.split(key)

    hidden_states = jax.random.normal(kx, (BATCH, SEQ, HIDDEN), jnp.float32)
    attention_mask = jnp.ones((BATCH, SEQ), jnp.float32).at[1, -1].set(0.0)  # one padded token
    params = init_params(kparam)

    layer_out, router_logits = deberta_v2_moe_layer(hidden_states, attention_mask, params)
    layer_out = jax.block_until_ready(layer_out)
    router_logits = jax.block_until_ready(router_logits)

    ref_out, ref_logits = reference_forward(hidden_states, attention_mask, params)

    assert layer_out.shape == (BATCH, SEQ, HIDDEN)
    assert router_logits.shape == (BATCH * SEQ, NUM_EXPERTS)
    # router path runs in f32 -> tight agreement
    np.testing.assert_allclose(np.asarray(router_logits), np.asarray(ref_logits),
                               atol=1e-2, rtol=1e-2)
    # expert FFN uses bf16 matmuls (f32 accumulation) + tanh-gelu -> slightly looser
    np.testing.assert_allclose(np.asarray(layer_out), np.asarray(ref_out),
                               atol=2e-2, rtol=2e-2)

    print("KERNEL_OK")
</pallas_src>

<mosaic_0001>
module attributes {stable_mosaic.version = 11 : i64} {
  func.func @_fused_kernel(%arg0: memref<16x32xf32, #tpu.memory_space<vmem>>, %arg1: memref<16x16xf32, #tpu.memory_space<vmem>>, %arg2: memref<32x32xf32, #tpu.memory_space<vmem>>, %arg3: memref<1x32xf32, #tpu.memory_space<vmem>>, %arg4: memref<32x32xf32, #tpu.memory_space<vmem>>, %arg5: memref<1x32xf32, #tpu.memory_space<vmem>>, %arg6: memref<32x32xf32, #tpu.memory_space<vmem>>, %arg7: memref<1x32xf32, #tpu.memory_space<vmem>>, %arg8: memref<32x32xf32, #tpu.memory_space<vmem>>, %arg9: memref<1x32xf32, #tpu.memory_space<vmem>>, %arg10: memref<1x32xf32, #tpu.memory_space<vmem>>, %arg11: memref<1x32xf32, #tpu.memory_space<vmem>>, %arg12: memref<32x128xf32, #tpu.memory_space<vmem>>, %arg13: memref<32x256xbf16, #tpu.memory_space<vmem>>, %arg14: memref<1x256xf32, #tpu.memory_space<vmem>>, %arg15: memref<256x128xbf16, #tpu.memory_space<vmem>>, %arg16: memref<1x128xf32, #tpu.memory_space<vmem>>, %arg17: memref<1x128xf32, #tpu.memory_space<vmem>>, %arg18: memref<1x128xf32, #tpu.memory_space<vmem>>, %arg19: memref<128x128xf32, #tpu.memory_space<vmem>>, %arg20: memref<128x128xf32, #tpu.memory_space<vmem>>, %arg21: memref<128x128xf32, #tpu.memory_space<vmem>>, %arg22: memref<16x128xf32, #tpu.memory_space<vmem>>, %arg23: memref<16x128xf32, #tpu.memory_space<vmem>>) attributes {dimension_semantics = [], scalar_prefetch = 0 : i64, scratch_operands = 0 : i64, tpu.core_type = #tpu.core_type<tc>} {
    %c0 = arith.constant 0 : index
    %c0_0 = arith.constant 0 : index
    %0 = vector.load %arg0[%c0, %c0_0] : memref<16x32xf32, #tpu.memory_space<vmem>>, vector<16x32xf32>
    %c0_1 = arith.constant 0 : index
    %c0_2 = arith.constant 0 : index
    %1 = vector.load %arg1[%c0_1, %c0_2] : memref<16x16xf32, #tpu.memory_space<vmem>>, vector<16x16xf32>
    %cst = arith.constant 0.000000e+00 : f32
    %2 = vector.broadcast %cst : f32 to vector<16x16xf32>
    %3 = arith.cmpf ogt, %1, %2 : vector<16x16xf32>
    %c0_3 = arith.constant 0 : index
    %c0_4 = arith.constant 0 : index
    %4 = vector.load %arg2[%c0_3, %c0_4] : memref<32x32xf32, #tpu.memory_space<vmem>>, vector<32x32xf32>
    %cst_5 = arith.constant dense<0.000000e+00> : vector<16x32xf32>
    %5 = tpu.matmul %0, %4, %cst_5 {dimension_numbers = #tpu.dot_dimension_numbers<[1], [0], [0], [1], [0, 0, 1, 1], [], []>} : vector<16x32xf32>, vector<32x32xf32>, vector<16x32xf32> -> vector<16x32xf32>
    %c0_6 = arith.constant 0 : index
    %c0_7 = arith.constant 0 : index
    %6 = vector.load %arg3[%c0_6, %c0_7] : memref<1x32xf32, #tpu.memory_space<vmem>>, vector<1x32xf32>
    %7 = vector.broadcast %6 : vector<1x32xf32> to vector<16x32xf32>
    %8 = arith.addf %5, %7 : vector<16x32xf32>
    %c0_8 = arith.constant 0 : index
    %c0_9 = arith.constant 0 : index
    %9 = vector.load %arg4[%c0_8, %c0_9] : memref<32x32xf32, #tpu.memory_space<vmem>>, vector<32x32xf32>
    %cst_10 = arith.constant dense<0.000000e+00> : vector<16x32xf32>
    %10 = tpu.matmul %0, %9, %cst_10 {dimension_numbers = #tpu.dot_dimension_numbers<[1], [0], [0], [1], [0, 0, 1, 1], [], []>} : vector<16x32xf32>, vector<32x32xf32>, vector<16x32xf32> -> vector<16x32xf32>
    %c0_11 = arith.constant 0 : index
    %c0_12 = arith.constant 0 : index
    %11 = vector.load %arg5[%c0_11, %c0_12] : memref<1x32xf32, #tpu.memory_space<vmem>>, vector<1x32xf32>
    %12 = vector.broadcast %11 : vector<1x32xf32> to vector<16x32xf32>
    %13 = arith.addf %10, %12 : vector<16x32xf32>
    %c0_13 = arith.constant 0 : index
    %c0_14 = arith.constant 0 : index
    %14 = vector.load %arg6[%c0_13, %c0_14] : memref<32x32xf32, #tpu.memory_space<vmem>>, vector<32x32xf32>
    %cst_15 = arith.constant dense<0.000000e+00> : vector<16x32xf32>
    %15 = tpu.matmul %0, %14, %cst_15 {dimension_numbers = #tpu.dot_dimension_numbers<[1], [0], [0], [1], [0, 0, 1, 1], [], []>} : vector<16x32xf32>, vector<32x32xf32>, vector<16x32xf32> -> vector<16x32xf32>
    %c0_16 = arith.constant 0 : index
    %c0_17 = arith.constant 0 : index
    %16 = vector.load %arg7[%c0_16, %c0_17] : memref<1x32xf32, #tpu.memory_space<vmem>>, vector<1x32xf32>
    %17 = vector.broadcast %16 : vector<1x32xf32> to vector<16x32xf32>
    %18 = arith.addf %15, %17 : vector<16x32xf32>
    %19 = vector.extract_strided_slice %8 {offsets = [0, 0], sizes = [16, 16], strides = [1, 1]} : vector<16x32xf32> to vector<16x16xf32>
    %20 = vector.extract_strided_slice %13 {offsets = [0, 0], sizes = [16, 16], strides = [1, 1]} : vector<16x32xf32> to vector<16x16xf32>
    %21 = vector.extract_strided_slice %18 {offsets = [0, 0], sizes = [16, 16], strides = [1, 1]} : vector<16x32xf32> to vector<16x16xf32>
    %cst_18 = arith.constant dense<0.000000e+00> : vector<16x16xf32>
    %22 = tpu.matmul %19, %20, %cst_18 {dimension_numbers = #tpu.dot_dimension_numbers<[1], [1], [0], [0], [0, 0, 1, 0], [], []>} : vector<16x16xf32>, vector<16x16xf32>, vector<16x16xf32> -> vector<16x16xf32>
    %cst_19 = arith.constant -3.40282347E+38 : f32
    %23 = vector.broadcast %cst_19 : f32 to vector<16x16xf32>
    %24 = arith.select %3, %22, %23 : vector<16x16xi1>, vector<16x16xf32>
    %cst_20 = arith.constant dense<0xFF800000> : vector<16xf32>
    %25 = vector.multi_reduction <maximumf>, %24, %cst_20 [1] : vector<16x16xf32> to vector<16xf32>
    %cst_21 = arith.constant 0xFF800000 : f32
    %26 = vector.broadcast %cst_21 : f32 to vector<16xf32>
    %27 = arith.maximumf %26, %25 : vector<16xf32>
    %28 = vector.shape_cast %27 : vector<16xf32> to vector<16x1xf32>
    %29 = vector.broadcast %28 : vector<16x1xf32> to vector<16x16xf32>
    %30 = arith.subf %24, %29 : vector<16x16xf32>
    %31 = math.exp %30 : vector<16x16xf32>
    %cst_22 = arith.constant dense<0.000000e+00> : vector<16xf32>
    %32 = vector.multi_reduction <add>, %31, %cst_22 [1] : vector<16x16xf32> to vector<16xf32>
    %33 = vector.shape_cast %32 : vector<16xf32> to vector<16x1xf32>
    %34 = vector.broadcast %33 : vector<16x1xf32> to vector<16x16xf32>
    %35 = arith.divf %31, %34 : vector<16x16xf32>
    %cst_23 = arith.constant 0.000000e+00 : f32
    %36 = vector.broadcast %cst_23 : f32 to vector<16x16xf32>
    %37 = arith.select %3, %35, %36 : vector<16x16xi1>, vector<16x16xf32>
    %cst_24 = arith.constant dense<0.000000e+00> : vector<16x16xf32>
    %38 = tpu.matmul %37, %21, %cst_24 {dimension_numbers = #tpu.dot_dimension_numbers<[1], [0], [0], [1], [0, 0, 1, 1], [], []>} : vector<16x16xf32>, vector<16x16xf32>, vector<16x16xf32> -> vector<16x16xf32>
    %39 = vector.extract_strided_slice %8 {offsets = [0, 16], sizes = [16, 16], strides = [1, 1]} : vector<16x32xf32> to vector<16x16xf32>
    %40 = vector.extract_strided_slice %13 {offsets = [0, 16], sizes = [16, 16], strides = [1, 1]} : vector<16x32xf32> to vector<16x16xf32>
    %41 = vector.extract_strided_slice %18 {offsets = [0, 16], sizes = [16, 16], strides = [1, 1]} : vector<16x32xf32> to vector<16x16xf32>
    %cst_25 = arith.constant dense<0.000000e+00> : vector<16x16xf32>
    %42 = tpu.matmul %39, %40, %cst_25 {dimension_numbers = #tpu.dot_dimension_numbers<[1], [1], [0], [0], [0, 0, 1, 0], [], []>} : vector<16x16xf32>, vector<16x16xf32>, vector<16x16xf32> -> vector<16x16xf32>
    %cst_26 = arith.constant -3.40282347E+38 : f32
    %43 = vector.broadcast %cst_26 : f32 to vector<16x16xf32>
    %44 = arith.select %3, %42, %43 : vector<16x16xi1>, vector<16x16xf32>
    %cst_27 = arith.constant dense<0xFF800000> : vector<16xf32>
    %45 = vector.multi_reduction <maximumf>, %44, %cst_27 [1] : vector<16x16xf32> to vector<16xf32>
    %cst_28 = arith.constant 0xFF800000 : f32
    %46 = vector.broadcast %cst_28 : f32 to vector<16xf32>
    %47 = arith.maximumf %46, %45 : vector<16xf32>
    %48 = vector.shape_cast %47 : vector<16xf32> to vector<16x1xf32>
    %49 = vector.broadcast %48 : vector<16x1xf32> to vector<16x16xf32>
    %50 = arith.subf %44, %49 : vector<16x16xf32>
    %51 = math.exp %50 : vector<16x16xf32>
    %cst_29 = arith.constant dense<0.000000e+00> : vector<16xf32>
    %52 = vector.multi_reduction <add>, %51, %cst_29 [1] : vector<16x16xf32> to vector<16xf32>
    %53 = vector.shape_cast %52 : vector<16xf32> to vector<16x1xf32>
    %54 = vector.broadcast %53 : vector<16x1xf32> to vector<16x16xf32>
    %55 = arith.divf %51, %54 : vector<16x16xf32>
    %cst_30 = arith.constant 0.000000e+00 : f32
    %56 = vector.broadcast %cst_30 : f32 to vector<16x16xf32>
    %57 = arith.select %3, %55, %56 : vector<16x16xi1>, vector<16x16xf32>
    %cst_31 = arith.constant dense<0.000000e+00> : vector<16x16xf32>
    %58 = tpu.matmul %57, %41, %cst_31 {dimension_numbers = #tpu.dot_dimension_numbers<[1], [0], [0], [1], [0, 0, 1, 1], [], []>} : vector<16x16xf32>, vector<16x16xf32>, vector<16x16xf32> -> vector<16x16xf32>
    %59 = tpu.concatenate %38, %58 in 1 : vector<16x16xf32>, vector<16x16xf32> -> vector<16x32xf32>
    %c0_32 = arith.constant 0 : index
    %c0_33 = arith.constant 0 : index
    %60 = vector.load %arg8[%c0_32, %c0_33] : memref<32x32xf32, #tpu.memory_space<vmem>>, vector<32x32xf32>
    %cst_34 = arith.constant dense<0.000000e+00> : vector<16x32xf32>
    %61 = tpu.matmul %59, %60, %cst_34 {dimension_numbers = #tpu.dot_dimension_numbers<[1], [0], [0], [1], [0, 0, 1, 1], [], []>} : vector<16x32xf32>, vector<32x32xf32>, vector<16x32xf32> -> vector<16x32xf32>
    %c0_35 = arith.constant 0 : index
    %c0_36 = arith.constant 0 : index
    %62 = vector.load %arg9[%c0_35, %c0_36] : memref<1x32xf32, #tpu.memory_space<vmem>>, vector<1x32xf32>
    %63 = vector.broadcast %62 : vector<1x32xf32> to vector<16x32xf32>
    %64 = arith.addf %61, %63 : vector<16x32xf32>
    %65 = arith.addf %64, %0 : vector<16x32xf32>
    %c0_37 = arith.constant 0 : index
    %c0_38 = arith.constant 0 : index
    %66 = vector.load %arg10[%c0_37, %c0_38] : memref<1x32xf32, #tpu.memory_space<vmem>>, vector<1x32xf32>
    %c0_39 = arith.constant 0 : index
    %c0_40 = arith.constant 0 : index
    %67 = vector.load %arg11[%c0_39, %c0_40] : memref<1x32xf32, #tpu.memory_space<vmem>>, vector<1x32xf32>
    %cst_41 = arith.constant dense<0.000000e+00> : vector<16xf32>
    %68 = vector.multi_reduction <add>, %65, %cst_41 [1] : vector<16x32xf32> to vector<16xf32>
    %69 = vector.shape_cast %68 : vector<16xf32> to vector<16x1xf32>
    %cst_42 = arith.constant 3.200000e+01 : f32
    %70 = vector.broadcast %cst_42 : f32 to vector<16x1xf32>
    %71 = arith.divf %69, %70 : vector<16x1xf32>
    %72 = vector.broadcast %71 : vector<16x1xf32> to vector<16x32xf32>
    %73 = arith.subf %65, %72 : vector<16x32xf32>
    %74 = arith.mulf %73, %73 : vector<16x32xf32>
    %cst_43 = arith.constant dense<0.000000e+00> : vector<16xf32>
    %75 = vector.multi_reduction <add>, %74, %cst_43 [1] : vector<16x32xf32> to vector<16xf32>
    %76 = vector.shape_cast %75 : vector<16xf32> to vector<16x1xf32>
    %cst_44 = arith.constant 3.200000e+01 : f32
    %77 = vector.broadcast %cst_44 : f32 to vector<16x1xf32>
    %78 = arith.divf %76, %77 : vector<16x1xf32>
    %79 = vector.broadcast %71 : vector<16x1xf32> to vector<16x32xf32>
    %80 = arith.subf %65, %79 : vector<16x32xf32>
    %cst_45 = arith.constant 1.000000e-07 : f32
    %81 = vector.broadcast %cst_45 : f32 to vector<16x1xf32>
    %82 = arith.addf %78, %81 : vector<16x1xf32>
    %83 = math.rsqrt %82 : vector<16x1xf32>
    %84 = vector.broadcast %83 : vector<16x1xf32> to vector<16x32xf32>
    %85 = arith.mulf %80, %84 : vector<16x32xf32>
    %86 = vector.broadcast %66 : vector<1x32xf32> to vector<16x32xf32>
    %87 = arith.mulf %85, %86 : vector<16x32xf32>
    %88 = vector.broadcast %67 : vector<1x32xf32> to vector<16x32xf32>
    %89 = arith.addf %87, %88 : vector<16x32xf32>
    %c0_46 = arith.constant 0 : index
    %c0_47 = arith.constant 0 : index
    %90 = vector.load %arg12[%c0_46, %c0_47] : memref<32x128xf32, #tpu.memory_space<vmem>>, vector<32x128xf32>
    %cst_48 = arith.constant dense<0.000000e+00> : vector<16x128xf32>
    %91 = tpu.matmul %89, %90, %cst_48 {dimension_numbers = #tpu.dot_dimension_numbers<[1], [0], [0], [1], [0, 0, 1, 1], [], []>} : vector<16x32xf32>, vector<32x128xf32>, vector<16x128xf32> -> vector<16x128xf32>
    %c0_49 = arith.constant 0 : index
    %c0_50 = arith.constant 0 : index
    %92 = vector.load %arg23[%c0_49, %c0_50] : memref<16x128xf32, #tpu.memory_space<vmem>>, vector<16x128xf32>
    tpu.vector_store %arg23[%c0_49, %c0_50], %91 {strides = array<i32>} : memref<16x128xf32, #tpu.memory_space<vmem>>, vector<16x128xf32>,
    %93 = tpu.iota {dimensions = array<i32: 1>} : vector<16x128xi32>
    %c4_i32 = arith.constant 4 : i32
    %94 = vector.broadcast %c4_i32 : i32 to vector<16x128xi32>
    %95 = arith.cmpi slt, %93, %94 : vector<16x128xi32>
    %cst_51 = arith.constant -3.40282347E+38 : f32
    %96 = vector.broadcast %cst_51 : f32 to vector<16x128xf32>
    %97 = arith.select %95, %91, %96 : vector<16x128xi1>, vector<16x128xf32>
    %cst_52 = arith.constant dense<0xFF800000> : vector<16xf32>
    %98 = vector.multi_reduction <maximumf>, %97, %cst_52 [1] : vector<16x128xf32> to vector<16xf32>
    %cst_53 = arith.constant 0xFF800000 : f32
    %99 = vector.broadcast %cst_53 : f32 to vector<16xf32>
    %100 = arith.maximumf %99, %98 : vector<16xf32>
    %101 = vector.shape_cast %100 : vector<16xf32> to vector<16x1xf32>
    %102 = vector.broadcast %101 : vector<16x1xf32> to vector<16x128xf32>
    %103 = arith.subf %97, %102 : vector<16x128xf32>
    %104 = math.exp %103 : vector<16x128xf32>
    %cst_54 = arith.constant dense<0.000000e+00> : vector<16xf32>
    %105 = vector.multi_reduction <add>, %104, %cst_54 [1] : vector<16x128xf32> to vector<16xf32>
    %106 = vector.shape_cast %105 : vector<16xf32> to vector<16x1xf32>
    %107 = vector.broadcast %106 : vector<16x1xf32> to vector<16x128xf32>
    %108 = arith.divf %104, %107 : vector<16x128xf32>
    %cst_55 = arith.constant 0.000000e+00 : f32
    %109 = vector.broadcast %cst_55 : f32 to vector<16x128xf32>
    %cst_56 = arith.constant dense<0xFF800000> : vector<16xf32>
    %110 = vector.multi_reduction <maximumf>, %108, %cst_56 [1] : vector<16x128xf32> to vector<16xf32>
    %111 = vector.shape_cast %110 : vector<16xf32> to vector<16x1xf32>
    %112 = vector.broadcast %111 : vector<16x1xf32> to vector<16x128xf32>
    %113 = arith.cmpf oge, %108, %112 : vector<16x128xf32>
    %c128_i32 = arith.constant 128 : i32
    %114 = vector.broadcast %c128_i32 : i32 to vector<16x128xi32>
    %115 = arith.select %113, %93, %114 : vector<16x128xi1>, vector<16x128xi32>
    %cst_57 = arith.constant dense<2147483647> : vector<16xi32>
    %116 = vector.multi_reduction <minsi>, %115, %cst_57 [1] : vector<16x128xi32> to vector<16xi32>
    %117 = vector.shape_cast %116 : vector<16xi32> to vector<16x1xi32>
    %118 = vector.broadcast %117 : vector<16x1xi32> to vector<16x128xi32>
    %119 = arith.cmpi eq, %93, %118 : vector<16x128xi32>
    %cst_58 = arith.constant 0.000000e+00 : f32
    %120 = vector.broadcast %cst_58 : f32 to vector<16x128xf32>
    %121 = arith.select %119, %108, %120 : vector<16x128xi1>, vector<16x128xf32>
    %122 = arith.addf %109, %121 : vector<16x128xf32>
    %cst_59 = arith.constant -1.000000e+00 : f32
    %123 = vector.broadcast %cst_59 : f32 to vector<16x128xf32>
    %124 = arith.select %119, %123, %108 : vector<16x128xi1>, vector<16x128xf32>
    %cst_60 = arith.constant dense<0xFF800000> : vector<16xf32>
    %125 = vector.multi_reduction <maximumf>, %124, %cst_60 [1] : vector<16x128xf32> to vector<16xf32>
    %126 = vector.shape_cast %125 : vector<16xf32> to vector<16x1xf32>
    %127 = vector.broadcast %126 : vector<16x1xf32> to vector<16x128xf32>
    %128 = arith.cmpf oge, %124, %127 : vector<16x128xf32>
    %c128_i32_61 = arith.constant 128 : i32
    %129 = vector.broadcast %c128_i32_61 : i32 to vector<16x128xi32>
    %130 = arith.select %128, %93, %129 : vector<16x128xi1>, vector<16x128xi32>
    %cst_62 = arith.constant dense<2147483647> : vector<16xi32>
    %131 = vector.multi_reduction <minsi>, %130, %cst_62 [1] : vector<16x128xi32> to vector<16xi32>
    %132 = vector.shape_cast %131 : vector<16xi32> to vector<16x1xi32>
    %133 = vector.broadcast %132 : vector<16x1xi32> to vector<16x128xi32>
    %134 = arith.cmpi eq, %93, %133 : vector<16x128xi32>
    %cst_63 = arith.constant 0.000000e+00 : f32
    %135 = vector.broadcast %cst_63 : f32 to vector<16x128xf32>
    %136 = arith.select %134, %108, %135 : vector<16x128xi1>, vector<16x128xf32>
    %137 = arith.addf %122, %136 : vector<16x128xf32>
    %cst_64 = arith.constant dense<0.000000e+00> : vector<16xf32>
    %138 = vector.multi_reduction <add>, %137, %cst_64 [1] : vector<16x128xf32> to vector<16xf32>
    %139 = vector.shape_cast %138 : vector<16xf32> to vector<16x1xf32>
    %140 = vector.broadcast %139 : vector<16x1xf32> to vector<16x128xf32>
    %141 = arith.divf %137, %140 : vector<16x128xf32>
    %c0_65 = arith.constant 0 : index
    %c0_66 = arith.constant 0 : index
    %142 = vector.load %arg20[%c0_65, %c0_66] : memref<128x128xf32, #tpu.memory_space<vmem>>, vector<128x128xf32>
    %cst_67 = arith.constant dense<0.000000e+00> : vector<16x128xf32>
    %143 = tpu.matmul %141, %142, %cst_67 {dimension_numbers = #tpu.dot_dimension_numbers<[1], [0], [0], [1], [0, 0, 1, 1], [], []>} : vector<16x128xf32>, vector<128x128xf32>, vector<16x128xf32> -> vector<16x128xf32>
    %144 = arith.truncf %89 : vector<16x32xf32> to vector<16x32xbf16>
    %c0_68 = arith.constant 0 : index
    %c0_69 = arith.constant 0 : index
    %145 = vector.load %arg13[%c0_68, %c0_69] : memref<32x256xbf16, #tpu.memory_space<vmem>>, vector<32x256xbf16>
    %cst_70 = arith.constant dense<0.000000e+00> : vector<16x256xf32>
    %146 = tpu.matmul %144, %145, %cst_70 {dimension_numbers = #tpu.dot_dimension_numbers<[1], [0], [0], [1], [0, 0, 1, 1], [], []>} : vector<16x32xbf16>, vector<32x256xbf16>, vector<16x256xf32> -> vector<16x256xf32>
    %c0_71 = arith.constant 0 : index
    %c0_72 = arith.constant 0 : index
    %147 = vector.load %arg14[%c0_71, %c0_72] : memref<1x256xf32, #tpu.memory_space<vmem>>, vector<1x256xf32>
    %148 = vector.broadcast %147 : vector<1x256xf32> to vector<16x256xf32>
    %149 = arith.addf %146, %148 : vector<16x256xf32>
    %cst_73 = arith.constant 5.000000e-01 : f32
    %150 = vector.broadcast %cst_73 : f32 to vector<16x256xf32>
    %151 = arith.mulf %150, %149 : vector<16x256xf32>
    %cst_74 = arith.constant 4.471500e-02 : f32
    %152 = vector.broadcast %cst_74 : f32 to vector<16x256xf32>
    %153 = arith.mulf %152, %149 : vector<16x256xf32>
    %154 = arith.mulf %153, %149 : vector<16x256xf32>
    %155 = arith.mulf %154, %149 : vector<16x256xf32>
    %156 = arith.addf %149, %155 : vector<16x256xf32>
    %cst_75 = arith.constant 0.797884583 : f32
    %157 = vector.broadcast %cst_75 : f32 to vector<16x256xf32>
    %158 = arith.mulf %157, %156 : vector<16x256xf32>
    %159 = math.tanh %158 : vector<16x256xf32>
    %cst_76 = arith.constant 1.000000e+00 : f32
    %160 = vector.broadcast %cst_76 : f32 to vector<16x256xf32>
    %161 = arith.addf %160, %159 : vector<16x256xf32>
    %162 = arith.mulf %151, %161 : vector<16x256xf32>
    %163 = arith.truncf %162 : vector<16x256xf32> to vector<16x256xbf16>
    %c0_77 = arith.constant 0 : index
    %c0_78 = arith.constant 0 : index
    %164 = vector.load %arg15[%c0_77, %c0_78] : memref<256x128xbf16, #tpu.memory_space<vmem>>, vector<256x128xbf16>
    %cst_79 = arith.constant dense<0.000000e+00> : vector<16x128xf32>
    %165 = tpu.matmul %163, %164, %cst_79 {dimension_numbers = #tpu.dot_dimension_numbers<[1], [0], [0], [1], [0, 0, 1, 1], [], []>} : vector<16x256xbf16>, vector<256x128xbf16>, vector<16x128xf32> -> vector<16x128xf32>
    %c0_80 = arith.constant 0 : index
    %c0_81 = arith.constant 0 : index
    %166 = vector.load %arg16[%c0_80, %c0_81] : memref<1x128xf32, #tpu.memory_space<vmem>>, vector<1x128xf32>
    %167 = vector.broadcast %166 : vector<1x128xf32> to vector<16x128xf32>
    %168 = arith.addf %165, %167 : vector<16x128xf32>
    %169 = tpu.concatenate %89, %89, %89, %89 in 1 : vector<16x32xf32>, vector<16x32xf32>, vector<16x32xf32>, vector<16x32xf32> -> vector<16x128xf32>
    %170 = arith.addf %168, %169 : vector<16x128xf32>
    %c0_82 = arith.constant 0 : index
    %c0_83 = arith.constant 0 : index
    %171 = vector.load %arg19[%c0_82, %c0_83] : memref<128x128xf32, #tpu.memory_space<vmem>>, vector<128x128xf32>
    %cst_84 = arith.constant dense<0.000000e+00> : vector<16x128xf32>
    %172 = tpu.matmul %170, %171, %cst_84 {dimension_numbers = #tpu.dot_dimension_numbers<[1], [0], [0], [1], [0, 0, 1, 1], [], []>} : vector<16x128xf32>, vector<128x128xf32>, vector<16x128xf32> -> vector<16x128xf32>
    %173 = arith.subf %170, %172 : vector<16x128xf32>
    %174 = arith.mulf %173, %173 : vector<16x128xf32>
    %c0_85 = arith.constant 0 : index
    %c0_86 = arith.constant 0 : index
    %175 = vector.load %arg19[%c0_85, %c0_86] : memref<128x128xf32, #tpu.memory_space<vmem>>, vector<128x128xf32>
    %cst_87 = arith.constant dense<0.000000e+00> : vector<16x128xf32>
    %176 = tpu.matmul %174, %175, %cst_87 {dimension_numbers = #tpu.dot_dimension_numbers<[1], [0], [0], [1], [0, 0, 1, 1], [], []>} : vector<16x128xf32>, vector<128x128xf32>, vector<16x128xf32> -> vector<16x128xf32>
    %cst_88 = arith.constant 1.000000e-07 : f32
    %177 = vector.broadcast %cst_88 : f32 to vector<16x128xf32>
    %178 = arith.addf %176, %177 : vector<16x128xf32>
    %179 = math.rsqrt %178 : vector<16x128xf32>
    %180 = arith.mulf %173, %179 : vector<16x128xf32>
    %c0_89 = arith.constant 0 : index
    %c0_90 = arith.constant 0 : index
    %181 = vector.load %arg17[%c0_89, %c0_90] : memref<1x128xf32, #tpu.memory_space<vmem>>, vector<1x128xf32>
    %182 = vector.broadcast %181 : vector<1x128xf32> to vector<16x128xf32>
    %183 = arith.mulf %180, %182 : vector<16x128xf32>
    %c0_91 = arith.constant 0 : index
    %c0_92 = arith.constant 0 : index
    %184 = vector.load %arg18[%c0_91, %c0_92] : memref<1x128xf32, #tpu.memory_space<vmem>>, vector<1x128xf32>
    %185 = vector.broadcast %184 : vector<1x128xf32> to vector<16x128xf32>
    %186 = arith.addf %183, %185 : vector<16x128xf32>
    %187 = arith.mulf %186, %143 : vector<16x128xf32>
    %c0_93 = arith.constant 0 : index
    %c0_94 = arith.constant 0 : index
    %188 = vector.load %arg21[%c0_93, %c0_94] : memref<128x128xf32, #tpu.memory_space<vmem>>, vector<128x128xf32>
    %cst_95 = arith.constant dense<0.000000e+00> : vector<16x128xf32>
    %189 = tpu.matmul %187, %188, %cst_95 {dimension_numbers = #tpu.dot_dimension_numbers<[1], [0], [0], [1], [0, 0, 1, 1], [], []>} : vector<16x128xf32>, vector<128x128xf32>, vector<16x128xf32> -> vector<16x128xf32>
    %c0_96 = arith.constant 0 : index
    %c0_97 = arith.constant 0 : index
    %190 = vector.load %arg22[%c0_96, %c0_97] : memref<16x128xf32, #tpu.memory_space<vmem>>, vector<16x128xf32>
    tpu.vector_store %arg22[%c0_96, %c0_97], %189 {strides = array<i32>} : memref<16x128xf32, #tpu.memory_space<vmem>>, vector<16x128xf32>,
    return
  }
}

</mosaic_0001>

<bundles_post_ra>
// kernel: tpu_custom_call.1
= control target key start
LH: loop header
LB: loop body
LE: loop exit
PB: predicated region body
PF: predicated region fallthrough
CT: control target
= control target key end

     0   :  { %s3581_s0 = inlined_call_operand.hbm [shape: f32[16,32], index: 0, kind: input, shape index: {}]   ;;  %s3582_s1 = inlined_call_operand.hbm [shape: f32[16,16], index: 1, kind: input, shape index: {}]   ;;  %s3583_s2 = inlined_call_operand.hbm [shape: f32[32,32], index: 2, kind: input, shape index: {}]   ;;  %s3584_s3 = inlined_call_operand.vmem [shape: f32[1,32], index: 3, kind: input, shape index: {}]   ;;  %s3585_s4 = inlined_call_operand.hbm [shape: f32[32,32], index: 4, kind: input, shape index: {}]   ;;  %s3586_s5 = inlined_call_operand.vmem [shape: f32[1,32], index: 5, kind: input, shape index: {}]   ;;  %s3587_s6 = inlined_call_operand.hbm [shape: f32[32,32], index: 6, kind: input, shape index: {}]   ;;  %s3588_s7 = inlined_call_operand.vmem [shape: f32[1,32], index: 7, kind: input, shape index: {}]   ;;  %s3589_s8 = inlined_call_operand.hbm [shape: f32[32,32], index: 8, kind: input, shape index: {}]   ;;  %s3590_s9 = inlined_call_operand.vmem [shape: f32[1,32], index: 9, kind: input, shape index: {}]   ;;  %s3591_s10 = inlined_call_operand.vmem [shape: f32[1,32], index: 10, kind: input, shape index: {}]   ;;  %s3592_s11 = inlined_call_operand.vmem [shape: f32[1,32], index: 11, kind: input, shape index: {}]   ;;  %s3593_s12 = inlined_call_operand.vmem [shape: f32[32,128], index: 12, kind: input, shape index: {}]   ;;  %s3594_s13 = inlined_call_operand.hbm [shape: bf16[32,256], index: 13, kind: input, shape index: {}]   ;;  %s3595_s14 = inlined_call_operand.vmem [shape: f32[1,256], index: 14, kind: input, shape index: {}]   ;;  %s3596_s15 = inlined_call_operand.hbm [shape: bf16[256,128], index: 15, kind: input, shape index: {}]   ;;  %s3597_s16 = inlined_call_operand.vmem [shape: f32[1,128], index: 16, kind: input, shape index: {}]   ;;  %s3598_s17 = inlined_call_operand.vmem [shape: f32[1,128], index: 17, kind: input, shape index: {}]   ;;  %s3599_s18 = inlined_call_operand.vmem [shape: f32[1,128], index: 18, kind: input, shape index: {}]   ;;  %s3600_s19 = inlined_call_operand.hbm [shape: f32[128,128], index: 19, kind: input, shape index: {}]   ;;  %s3601_s20 = inlined_call_operand.hbm [shape: f32[128,128], index: 20, kind: input, shape index: {}]   ;;  %s3602_s21 = inlined_call_operand.hbm [shape: f32[128,128], index: 21, kind: input, shape index: {}]   ;;  %s3603_s22 = inlined_call_operand.hbm [shape: f32[16,128], index: 22, kind: output, shape index: {0}]   ;;  %s3604_s23 = inlined_call_operand.hbm [shape: f32[16,128], index: 23, kind: output, shape index: {1}]  }
   0x1   :  { %3612 = sst [smem:[#allocation31_spill]] %s3581_s0 }
   0x2   :  { %3613 = sst [smem:[#allocation32_spill]] %s3582_s1 }
   0x3   :  { %3614 = sst [smem:[#allocation33_spill]] %s3583_s2 }
   0x4   :  { %3615 = sst [smem:[#allocation34_spill]] %s3584_s3 }
   0x5   :  { %3616 = sst [smem:[#allocation35_spill]] %s3585_s4 }
   0x6   :  { %3617 = sst [smem:[#allocation36_spill]] %s3586_s5 }
   0x7   :  { %3618 = sst [smem:[#allocation37_spill]] %s3587_s6 }
   0x8   :  { %3619 = sst [smem:[#allocation38_spill]] %s3588_s7 }
   0x9   :  { %3620 = sst [smem:[#allocation39_spill]] %s3603_s22 }
   0xa   :  { %3621 = sst [smem:[#allocation40_spill]] %s3604_s23 }
   0xb   :  { %29 = vsyncpa [#allocation3], 0 }
   0xc   :  { %30 = vsyncpa [#allocation6], 0 }
   0xd   :  { %31 = vsyncpa [#allocation9], 0 }
   0xe   :  { %32 = vsyncpa [#allocation12], 0 }
   0xf   :  { %33 = vsyncpa [#allocation15], 0 }
  0x10   :  { %34 = vsyncpa [#allocation18], 0 }
  0x11   :  { %35 = vsyncpa [#allocation4], 0 }
  0x12   :  { %36 = vsyncpa [#allocation22], 0  ;;  %s2994_s4 = smov [#allocation5]   ;;  %s2995_s24 = smov [#allocation8]  }
  0x13   :  { %s54_s30 = sshll.u32 %s2994_s4, 4  ;;  %s80_s25 = sshll.u32 %s2995_s24, 4  ;;  %s55_s30 = int_to_ptr.vmem [resolvable:$true] %s54_s30  ;;  %s3136_s25 = int_to_ptr.vmem [resolvable:$true] %s80_s25 }
  0x14   :  { %s3622_s26 = sld [smem:[#allocation32_spill]] }
  0x1a   :  { %s2692_s2 = scalar_lea.hbm %s3622_s26, 256 }
  0x1b   :  { %p2693_p0 = scmp.ne.s32.totalorder %s3622_s26, %s2692_s2  ;;  %p2696_p1 = scmp.lt.u32.totalorder %s2692_s2, %s3622_s26 }
  0x1d   :  { %p2698_p2 = pnand %p2696_p1, %p2693_p0 }
  0x1f   :  { %2701 = shalt.err (!%p2698_p2)
}
  0x20   :  { %s2702_s29 = scalar_lea.vmem %s55_s30, 256  ;;  %p2707_p4 = scmp.lt.s32.totalorder %s55_s30, %s55_s30 }
  0x21   :  { %p2703_p3 = scmp.ne.s32.totalorder %s55_s30, %s2702_s29  ;;  %p2708_p5 = scmp.lt.s32.totalorder %s2702_s29, %s2702_s29 }
  0x23   :  { %p2709_p6 = por %p2708_p5, %p2707_p4 }
  0x25   :  { %p2710_p7 = pnand %p2709_p6, %p2703_p3 }
  0x27   :  { %2713 = shalt.err (!%p2710_p7)
}
  0x28   :  { %s2996_s3 = smov 128   ;;  %s2997_s0 = smov 8  }
  0x29   :  { %60 = dma.hbm_to_vmem [thread:$0]  %s3622_s26, 256, %s55_s30, [#allocation6], %s2996_s3, %s2996_s3, %s2997_s0  }
  0x2a   :  { %s3623_s2 = sld [smem:[#allocation35_spill]] }
  0x30   :  { %s2714_s6 = scalar_lea.hbm %s3623_s2, 512 }
  0x31   :  { %p2715_p8 = scmp.ne.s32.totalorder %s3623_s2, %s2714_s6  ;;  %p2718_p9 = scmp.lt.u32.totalorder %s2714_s6, %s3623_s2 }
  0x33   :  { %p2720_p10 = pnand %p2718_p9, %p2715_p8 }
  0x35   :  { %2723 = shalt.err (!%p2720_p10)
}
  0x36   :  { %s2724_s22 = scalar_lea.vmem %s3136_s25, 512  ;;  %p2729_p12 = scmp.lt.s32.totalorder %s3136_s25, %s3136_s25 }
  0x37   :  { %p2725_p11 = scmp.ne.s32.totalorder %s3136_s25, %s2724_s22  ;;  %p2730_p13 = scmp.lt.s32.totalorder %s2724_s22, %s2724_s22 }
  0x39   :  { %p2731_p0 = por %p2730_p13, %p2729_p12 }
  0x3b   :  { %p2732_p1 = pnand %p2731_p0, %p2725_p11 }
  0x3d   :  { %2735 = shalt.err (!%p2732_p1)
}
  0x3e   :  { %86 = dma.hbm_to_vmem [thread:$0]  %s3623_s2, 512, %s3136_s25, [#allocation9], %s2996_s3, %s2996_s3, %s2997_s0  }
  0x3f   :  { %s2998_s4 = smov [#allocation11]   ;;  %s2999_s5 = smov [#allocation14]  }
  0x40   :  { %s108_s24 = sshll.u32 %s2998_s4, 4  ;;  %s142_s1 = sshll.u32 %s2999_s5, 4  ;;  %s109_s24 = int_to_ptr.vmem [resolvable:$true] %s108_s24  ;;  %s3173_s1 = int_to_ptr.vmem [resolvable:$true] %s142_s1 }
  0x41   :  { %s2736_s27 = scalar_lea.hbm %s3589_s8, 512 }
  0x42   :  { %p2737_p2 = scmp.ne.s32.totalorder %s3589_s8, %s2736_s27  ;;  %p2740_p3 = scmp.lt.u32.totalorder %s2736_s27, %s3589_s8 }
  0x44   :  { %p2742_p4 = pnand %p2740_p3, %p2737_p2 }
  0x46   :  { %2745 = shalt.err (!%p2742_p4)
}
  0x47   :  { %s2746_s25 = scalar_lea.vmem %s109_s24, 512  ;;  %p2751_p6 = scmp.lt.s32.totalorder %s109_s24, %s109_s24 }
  0x48   :  { %p2747_p5 = scmp.ne.s32.totalorder %s109_s24, %s2746_s25  ;;  %p2752_p7 = scmp.lt.s32.totalorder %s2746_s25, %s2746_s25 }
  0x4a   :  { %p2753_p8 = por %p2752_p7, %p2751_p6 }
  0x4c   :  { %p2754_p9 = pnand %p2753_p8, %p2747_p5 }
  0x4e   :  { %2757 = shalt.err (!%p2754_p9)
}
  0x4f   :  { %114 = dma.hbm_to_vmem [thread:$0]  %s3589_s8, 512, %s109_s24, [#allocation12], %s2996_s3, %s2996_s3, %s2997_s0  }
  0x50   :  { %s2758_s23 = scalar_lea.hbm %s3596_s15, 2048 }
  0x51   :  { %p2759_p10 = scmp.ne.s32.totalorder %s3596_s15, %s2758_s23  ;;  %p2762_p11 = scmp.lt.u32.totalorder %s2758_s23, %s3596_s15 }
  0x53   :  { %p2764_p12 = pnand %p2762_p11, %p2759_p10 }
  0x55   :  { %2767 = shalt.err (!%p2764_p12)
}
  0x56   :  { %s2768_s7 = scalar_lea.vmem %s3173_s1, 2048  ;;  %p2773_p0 = scmp.lt.s32.totalorder %s3173_s1, %s3173_s1 }
  0x57   :  { %p2769_p13 = scmp.ne.s32.totalorder %s3173_s1, %s2768_s7  ;;  %p2774_p1 = scmp.lt.s32.totalorder %s2768_s7, %s2768_s7 }
  0x59   :  { %p2775_p2 = por %p2774_p1, %p2773_p0 }
  0x5b   :  { %p2776_p3 = pnand %p2775_p2, %p2769_p13 }
  0x5d   :  { %2779 = shalt.err (!%p2776_p3)
}
  0x5e   :  { %s3000_s8 = smov 64   ;;  %s3001_s24 = smov 4  }
  0x5f   :  { %148 = dma.hbm_to_vmem [thread:$0]  %s3596_s15, 2048, %s3173_s1, [#allocation15], %s3000_s8, %s3000_s8, %s3001_s24  }
  0x60   :  { %s3002_s25 = smov [#allocation17]   ;;  %s3003_s30 = smov [#allocation2]  }
  0x61   :  { %s172_s2 = sshll.u32 %s3002_s25, 4  ;;  %s42_s26 = sshll.u32 %s3003_s30, 4  ;;  %s173_s2 = int_to_ptr.vmem [resolvable:$true] %s172_s2  ;;  %s3209_s26 = int_to_ptr.vmem [resolvable:$true] %s42_s26 }
  0x62   :  { %s2780_s5 = scalar_lea.hbm %s3601_s20, 2048 }
  0x63   :  { %p2781_p4 = scmp.ne.s32.totalorder %s3601_s20, %s2780_s5  ;;  %p2784_p5 = scmp.lt.u32.totalorder %s2780_s5, %s3601_s20 }
  0x65   :  { %p2786_p6 = pnand %p2784_p5, %p2781_p4 }
  0x67   :  { %2789 = shalt.err (!%p2786_p6)
}
  0x68   :  { %s2790_s15 = scalar_lea.vmem %s173_s2, 2048  ;;  %p2795_p8 = scmp.lt.s32.totalorder %s173_s2, %s173_s2 }
  0x69   :  { %p2791_p7 = scmp.ne.s32.totalorder %s173_s2, %s2790_s15  ;;  %p2796_p9 = scmp.lt.s32.totalorder %s2790_s15, %s2790_s15 }
  0x6b   :  { %p2797_p10 = por %p2796_p9, %p2795_p8 }
  0x6d   :  { %p2798_p11 = pnand %p2797_p10, %p2791_p7 }
  0x6f   :  { %2801 = shalt.err (!%p2798_p11)
}
  0x70   :  { %178 = dma.hbm_to_vmem [thread:$0]  %s3601_s20, 2048, %s173_s2, [#allocation18], %s2996_s3, %s2996_s3, %s2997_s0  }
  0x71   :  { %s3624_s25 = sld [smem:[#allocation31_spill]] }
  0x77   :  { %s2802_s30 = scalar_lea.hbm %s3624_s25, 256 }
  0x78   :  { %p2803_p12 = scmp.ne.s32.totalorder %s3624_s25, %s2802_s30  ;;  %p2806_p13 = scmp.lt.u32.totalorder %s2802_s30, %s3624_s25 }
  0x7a   :  { %p2808_p0 = pnand %p2806_p13, %p2803_p12 }
  0x7c   :  { %2811 = shalt.err (!%p2808_p0)
}
  0x7d   :  { %s2812_s22 = scalar_lea.vmem %s3209_s26, 256  ;;  %p2817_p2 = scmp.lt.s32.totalorder %s3209_s26, %s3209_s26 }
  0x7e   :  { %p2813_p1 = scmp.ne.s32.totalorder %s3209_s26, %s2812_s22  ;;  %p2818_p3 = scmp.lt.s32.totalorder %s2812_s22, %s2812_s22 }
  0x80   :  { %p2819_p4 = por %p2818_p3, %p2817_p2 }
  0x82   :  { %p2820_p5 = pnand %p2819_p4, %p2813_p1 }
  0x84   :  { %2823 = shalt.err (!%p2820_p5)
}
  0x85   :  { %48 = dma.hbm_to_vmem [thread:$0]  %s3624_s25, 256, %s3209_s26, [#allocation3], %s2996_s3, %s2996_s3, %s2997_s0  }
  0x86   :  { %s3004_s27 = smov [#allocation7]   ;;  %s3005_s15 = smov [#allocation10]  }
  0x87   :  { %s66_s7 = sshll.u32 %s3004_s27, 4  ;;  %s94_s1 = sshll.u32 %s3005_s15, 4  ;;  %s67_s7 = int_to_ptr.vmem [resolvable:$true] %s66_s7  ;;  %s3246_s1 = int_to_ptr.vmem [resolvable:$true] %s94_s1 }
  0x88   :  { %s3625_s29 = sld [smem:[#allocation33_spill]] }
  0x8e   :  { %s2824_s30 = scalar_lea.hbm %s3625_s29, 512 }
  0x8f   :  { %p2825_p6 = scmp.ne.s32.totalorder %s3625_s29, %s2824_s30  ;;  %p2828_p7 = scmp.lt.u32.totalorder %s2824_s30, %s3625_s29 }
  0x91   :  { %p2830_p8 = pnand %p2828_p7, %p2825_p6 }
  0x93   :  { %2833 = shalt.err (!%p2830_p8)
}
  0x94   :  { %s2834_s26 = scalar_lea.vmem %s67_s7, 512  ;;  %p2839_p10 = scmp.lt.s32.totalorder %s67_s7, %s67_s7 }
  0x95   :  { %p2835_p9 = scmp.ne.s32.totalorder %s67_s7, %s2834_s26  ;;  %p2840_p11 = scmp.lt.s32.totalorder %s2834_s26, %s2834_s26 }
  0x97   :  { %p2841_p12 = por %p2840_p11, %p2839_p10 }
  0x99   :  { %p2842_p13 = pnand %p2841_p12, %p2835_p9 }
  0x9b   :  { %2845 = shalt.err (!%p2842_p13)
}
  0x9c   :  { %72 = dma.hbm_to_vmem [thread:$0]  %s3625_s29, 512, %s67_s7, [#allocation6], %s2996_s3, %s2996_s3, %s2997_s0  }
  0x9d   :  { %s3626_s27 = sld [smem:[#allocation37_spill]] }
  0xa3   :  { %s2846_s15 = scalar_lea.hbm %s3626_s27, 512 }
  0xa4   :  { %p2847_p0 = scmp.ne.s32.totalorder %s3626_s27, %s2846_s15  ;;  %p2850_p1 = scmp.lt.u32.totalorder %s2846_s15, %s3626_s27 }
  0xa6   :  { %p2852_p2 = pnand %p2850_p1, %p2847_p0 }
  0xa8   :  { %2855 = shalt.err (!%p2852_p2)
}
  0xa9   :  { %s2856_s23 = scalar_lea.vmem %s3246_s1, 512  ;;  %p2861_p4 = scmp.lt.s32.totalorder %s3246_s1, %s3246_s1 }
  0xaa   :  { %p2857_p3 = scmp.ne.s32.totalorder %s3246_s1, %s2856_s23  ;;  %p2862_p5 = scmp.lt.s32.totalorder %s2856_s23, %s2856_s23 }
  0xac   :  { %p2863_p6 = por %p2862_p5, %p2861_p4 }
  0xae   :  { %p2864_p7 = pnand %p2863_p6, %p2857_p3 }
  0xb0   :  { %2867 = shalt.err (!%p2864_p7)
}
  0xb1   :  { %100 = dma.hbm_to_vmem [thread:$0]  %s3626_s27, 512, %s3246_s1, [#allocation9], %s2996_s3, %s2996_s3, %s2997_s0  }
  0xb2   :  { %s3006_s5 = smov [#allocation13]   ;;  %s3007_s26 = smov [#allocation16]  }
  0xb3   :  { %s128_s6 = sshll.u32 %s3006_s5, 4  ;;  %s160_s25 = sshll.u32 %s3007_s26, 4  ;;  %s129_s6 = int_to_ptr.vmem [resolvable:$true] %s128_s6  ;;  %s3283_s25 = int_to_ptr.vmem [resolvable:$true] %s160_s25 }
  0xb4   :  { %s2868_s2 = scalar_lea.hbm %s3594_s13, 512 }
  0xb5   :  { %p2869_p8 = scmp.ne.s32.totalorder %s3594_s13, %s2868_s2  ;;  %p2872_p9 = scmp.lt.u32.totalorder %s2868_s2, %s3594_s13 }
  0xb7   :  { %p2874_p10 = pnand %p2872_p9, %p2869_p8 }
  0xb9   :  { %2877 = shalt.err (!%p2874_p10)
}
  0xba   :  { %s2878_s1 = scalar_lea.vmem %s129_s6, 512  ;;  %p2883_p12 = scmp.lt.s32.totalorder %s129_s6, %s129_s6 }
  0xbb   :  { %p2879_p11 = scmp.ne.s32.totalorder %s129_s6, %s2878_s1  ;;  %p2884_p13 = scmp.lt.s32.totalorder %s2878_s1, %s2878_s1 }
  0xbd   :  { %p2885_p0 = por %p2884_p13, %p2883_p12 }
  0xbf   :  { %p2886_p1 = pnand %p2885_p0, %p2879_p11 }
  0xc1   :  { %2889 = shalt.err (!%p2886_p1)
}
  0xc2   :  { %134 = dma.hbm_to_vmem [thread:$0]  %s3594_s13, 512, %s129_s6, [#allocation12], %s2996_s3, %s2996_s3, %s2997_s0  }
  0xc3   :  { %s2890_s29 = scalar_lea.hbm %s3600_s19, 2048 }
  0xc4   :  { %p2891_p2 = scmp.ne.s32.totalorder %s3600_s19, %s2890_s29  ;;  %p2894_p3 = scmp.lt.u32.totalorder %s2890_s29, %s3600_s19 }
  0xc6   :  { %p2896_p4 = pnand %p2894_p3, %p2891_p2 }
  0xc8   :  { %2899 = shalt.err (!%p2896_p4)
}
  0xc9   :  { %s2900_s2 = scalar_lea.vmem %s3283_s25, 2048  ;;  %p2905_p6 = scmp.lt.s32.totalorder %s3283_s25, %s3283_s25 }
  0xca   :  { %p2901_p5 = scmp.ne.s32.totalorder %s3283_s25, %s2900_s2  ;;  %p2906_p7 = scmp.lt.s32.totalorder %s2900_s2, %s2900_s2 }
  0xcc   :  { %p2907_p8 = por %p2906_p7, %p2905_p6 }
  0xce   :  { %p2908_p9 = pnand %p2907_p8, %p2901_p5 }
  0xd0   :  { %2911 = shalt.err (!%p2908_p9)
}
  0xd1   :  { %166 = dma.hbm_to_vmem [thread:$0]  %s3600_s19, 2048, %s3283_s25, [#allocation15], %s2996_s3, %s2996_s3, %s2997_s0  }
  0xd2   :  { %s3008_s15 = smov [#allocation19]   ;;  %s2912_s1 = scalar_lea.hbm %s3602_s21, 2048 }
  0xd3   :  { %s184_s24 = sshll.u32 %s3008_s15, 4  ;;  %p2913_p10 = scmp.ne.s32.totalorder %s3602_s21, %s2912_s1  ;;  %s185_s24 = int_to_ptr.vmem [resolvable:$true] %s184_s24 }
  0xd4   :  { %p2916_p11 = scmp.lt.u32.totalorder %s2912_s1, %s3602_s21 }
  0xd6   :  { %p2918_p12 = pnand %p2916_p11, %p2913_p10 }
  0xd8   :  { %2921 = shalt.err (!%p2918_p12)
}
  0xd9   :  { %s2922_s29 = scalar_lea.vmem %s185_s24, 2048  ;;  %p2927_p0 = scmp.lt.s32.totalorder %s185_s24, %s185_s24 }
  0xda   :  { %p2923_p13 = scmp.ne.s32.totalorder %s185_s24, %s2922_s29  ;;  %p2928_p1 = scmp.lt.s32.totalorder %s2922_s29, %s2922_s29 }
  0xdc   :  { %p2929_p2 = por %p2928_p1, %p2927_p0 }
  0xde   :  { %p2930_p3 = pnand %p2929_p2, %p2923_p13 }
  0xe0   :  { %2933 = shalt.err (!%p2930_p3)
}
  0xe1   :  { %190 = dma.hbm_to_vmem [thread:$0]  %s3602_s21, 2048, %s185_s24, [#allocation18], %s2996_s3, %s2996_s3, %s2997_s0  }
  0xe2   :  { %2978 = dma.done.wait [#allocation3], 256  }
  0xe3   :  { %2979 = vsyncadd [#allocation3], 4294967040 }
  0xe4   :  { %2980 = dma.done.wait [#allocation6], 768  }
  0xe5   :  { %2981 = vsyncadd [#allocation6], 4294966528 }
  0xe6   :  { %2982 = dma.done.wait [#allocation9], 1024  }
  0xe7   :  { %2983 = vsyncadd [#allocation9], 4294966272 }
  0xe8   :  { %2984 = dma.done.wait [#allocation12], 1024  }
  0xe9   :  { %2985 = vsyncadd [#allocation12], 4294966272 }
  0xea   :  { %2986 = dma.done.wait [#allocation15], 4096  }
  0xeb   :  { %2987 = vsyncadd [#allocation15], 4294963200 }
  0xec   :  { %2988 = dma.done.wait [#allocation18], 4096  }
  0xed   :  { %2989 = vsyncadd [#allocation18], 4294963200  ;;  %vm242_vm0 = vcmask 261120   ;;  %v231_v0 = vld [vmem:[#allocation7] sm:$0xff]  ;;  %v232_v1 = vld [vmem:[#allocation7 + $0x8] sm:$0xff]  ;;  %s3627_s26 = sld [smem:[#allocation34_spill]] }
  0xee   :  { %v233_v2 = vld [vmem:[#allocation7 + $0x10] sm:$0xff]  ;;  %v2406_v3 = vpack.c.bf16 %v232_v1, %v231_v0  ;;  %v234_v4 = vld [vmem:[#allocation7 + $0x18] sm:$0xff]  ;;  %v3335_v5 = vld [vmem:[#allocation2] sm:$0xff]  ;;  %vm496_vm1 = vcmask 130048   ;;  %s3009_s22 = smov 112   ;;  %s3628_s13 = sld [smem:[#allocation36_spill]] }
  0xef   :  { %v2410_v6 = vpack.c.bf16 %v234_v4, %v233_v2  ;;  %2191 = vmatprep.mubr.msk.f32.mxu1 %vm242_vm0, %v3335_v5  ;;  %v324_v7 = vld [vmem:[#allocation8] sm:$0xff]  ;;  %v325_v8 = vld [vmem:[#allocation8 + $0x8] sm:$0xff]  ;;  %2213 = vmatprep.mubr.msk.f32.mxu0 %vm242_vm0, %v3335_v5  ;;  %v326_v9 = vld [vmem:[#allocation8 + $0x10] sm:$0xff]  ;;  %s3631_s24 = sld [smem:[#allocation38_spill]]  ;;  %s3010_s28 = smov 16  }
  0xf0   :  { %2407 = vmatprep.subr.bf16.mxu1 %v2406_v3  ;;  %v327_v10 = vld [vmem:[#allocation8 + $0x18] sm:$0xff]  ;;  %v2414_v11 = vpack.c.bf16 %v325_v8, %v324_v7  ;;  %v3341_v12 = vld [vmem:[#allocation2 + $0x8] sm:$0xff]  ;;  %v410_v14 = vld [vmem:[#allocation10] sm:$0xff]  ;;  %s3014_s15 = smov [#allocation21]  }
  0xf1   :  { %2409 = vmatpush3.bf16.msra.mxu1 %v2406_v3  ;;  %v2418_v13 = vpack.c.bf16 %v327_v10, %v326_v9  ;;  %v411_v15 = vld [vmem:[#allocation10 + $0x8] sm:$0xff]  ;;  %v412_v16 = vld [vmem:[#allocation10 + $0x10] sm:$0xff]  ;;  %v413_v18 = vld [vmem:[#allocation10 + $0x18] sm:$0xff] }
  0xf2   :  { %2411 = vmatprep.subr.bf16.mxu1 %v2410_v6  ;;  %v2422_v17 = vpack.c.bf16 %v411_v15, %v410_v14  ;;  %v2426_v19 = vpack.c.bf16 %v413_v18, %v412_v16  ;;  %vm3361_vm2 = vmpackc.low %vm496_vm1, %vm496_vm1  ;;  %v3370_v33 = vld [vmem:[#allocation5] sm:$0xff]  ;;  %v3372_v34 = vld [vmem:[#allocation5 + $0x8] sm:$0xff] }
  0xf3   :  { %v1991_v20 = vld [vmem:[%s3627_s26] ss:$0 sm:$0xff]  ;;  %vm229_vm3 = vcmp.gt.f32.partialorder %v3370_v33, 0.0  ;;  %vm230_vm4 = vcmp.gt.f32.partialorder %v3372_v34, 0.0 }
  0xf4   :  { %2423 = vmatprep.subr.bf16.mxu0 %v2422_v17  ;;  %v1994_v24 = vld [vmem:[%s3628_s13] ss:$0 sm:$0xff] }
  0xf5   :  { %2413 = vmatpush3.bf16.msra.mxu1 %v2410_v6  ;;  %2425 = vmatpush3.bf16.msra.mxu0 %v2422_v17  ;;  %v1997_v42 = vld [vmem:[%s3631_s24] ss:$0 sm:$0xff]  ;;  %s1970_s24 = sshll.u32 %s3014_s15, 4  ;;  %s1971_s24 = int_to_ptr.vmem [resolvable:$true] %s1970_s24 }
  0xf6   :  { %2415 = vmatprep.subr.bf16.mxu1 %v2414_v11  ;;  %2427 = vmatprep.subr.bf16.mxu0 %v2426_v19  ;;  %p2939_p5 = scmp.lt.s32.totalorder %s1971_s24, %s1971_s24 }
  0xf8   :  { %2192 = vmatmul.mubr.msk.f32.vlgmr.msra.gmra.mrb[0].mxu1 %vm242_vm0, %v3341_v12 }
  0xf9   :  { %2417 = vmatpush3.bf16.msra.mxu1 %v2414_v11  ;;  %2202 = vmatprep.mubr.msk.f32.mxu1 %vm242_vm0, %v3335_v5 }
  0xfa   :  { %2419 = vmatprep.subr.bf16.mxu1 %v2418_v13  ;;  %2429 = vmatpush3.bf16.msra.mxu0 %v2426_v19 }
  0xfd   :  { %2421 = vmatpush3.bf16.msra.mxu1 %v2418_v13  ;;  %2214 = vmatmul.mubr.msk.f32.vlgmr.msra.gmra.mrb[0].mxu0 %vm242_vm0, %v3341_v12 }
 0x100   :  { %2203 = vmatmul.mubr.msk.f32.vlgmr.msra.gmra.mrb[2].mxu1 %vm242_vm0, %v3341_v12 }
 0x1cb   :  { %v2193_v21 = vpop.f32.mrb[0].mxu1 }
 0x1cc   :  { %v315_v22 = vpop.f32.mrb[1].mxu1  ;;  %v321_v32 = vadd.f32 %v2193_v21, %v1991_v20 }
 0x1cd   :  { %v316_v23 = vadd.f32 %v1991_v20, %v315_v22 }
 0x1cf   :  { %691 = vrot.lane.b32.xlu1 %v316_v23, %s3009_s22  ;;  %2220 = vmatprep.mubr.msk.f32.mxu1 %vm496_vm1, %v316_v23 }
 0x1d0   :  { %v2215_v41 = vpop.f32.mrb[0].mxu0 }
 0x1d1   :  { %v487_v43 = vpop.f32.mrb[1].mxu0  ;;  %v493_v44 = vadd.f32 %v2215_v41, %v1997_v42 }
 0x1d2   :  { %v488_v45 = vadd.f32 %v1997_v42, %v487_v43  ;;  %v907_v42 = vld [vmem:[#allocation11] sm:$0xff]  ;;  %v908_v43 = vld [vmem:[#allocation11 + $0x8] sm:$0xff] }
 0x1d3   :  { %v2204_v25 = vpop.f32.mrb[2].mxu1 }
 0x1d4   :  { %v407_v26 = vadd.f32 %v2204_v25, %v1994_v24  ;;  %v401_v27 = vpop.f32.mrb[3].mxu1  ;;  %v2621_v46 = vpack.i.bf16 %v493_v44, %v488_v45  ;;  %v2436_v47 = vpack.c.bf16 %v493_v44, %v488_v45  ;;  %v909_v44 = vld [vmem:[#allocation11 + $0x10] sm:$0xff]  ;;  %v2450_v45 = vpack.c.bf16 %v908_v43, %v907_v42  ;;  %v2638_v43 = vld [vmem:[#allocation14 + $0x58] sm:$0xff]  }
 0x1d5   :  { %v402_v28 = vadd.f32 %v1994_v24, %v401_v27  ;;  %v2637_v42 = vld [vmem:[#allocation14 + $0x10] sm:$0xff]  }
 0x1d7   :  { %v2616_v30 = vpack.i.bf16 %v407_v26, %v402_v28  ;;  %v2430_v31 = vpack.c.bf16 %v407_v26, %v402_v28 }
 0x1d9   :  { %2432 = vmatprep.subr.msk.bf16.mxu1 %vm3361_vm2, %v2430_v31 }
 0x1da   :  { %2435 = vmatpush3.bf16.xpose.msk.msra.mxu1 %vm3361_vm2, %v2430_v31 }
 0x1db   :  { %2437 = vmatprep.subr.bf16.mxu1 %v2436_v47 }
 0x1e1   :  { %2221 = vmatmul.mubr.msk.f32.vlgmr.msra.gmra.mrb[4].mxu1 %vm496_vm1, %v321_v32 }
 0x1e2   :  { %2439 = vmatpush3.bf16.msra.mxu1 %v2436_v47 }
 0x241   :  { %v692_v62 = vpop.permute.xlu1 %691 }
 0x2b4   :  { %v2222_v35 = vpop.f32.mrb[4].mxu1 }
 0x2b5   :  { %v575_v36 = vpop.f32.mrb[5].mxu1  ;;  %v585_v39 = vsel %vm230_vm4, %v2222_v35, -3.4028235e+38 }
 0x2b6   :  { %v584_v37 = vsel %vm229_vm3, %v575_v36, -3.4028235e+38  ;;  %v589_v40 = vsel %vm496_vm1, %v585_v39, -inf }
 0x2b7   :  { %v586_v38 = vsel %vm496_vm1, %v584_v37, -inf }
 0x2b8   :  { %587 = vmax.xlane.f32.xlu0 %v586_v38 }
 0x2bc   :  { %590 = vmax.xlane.f32.xlu0 %v589_v40 }
 0x2d2   :  { %2617 = vrot.lane.b32.xlu0 %v2616_v30, %s3009_s22 }
 0x345   :  { %v588_v48 = vpop.xlane.xlu0 %587 }
 0x346   :  { %v592_v49 = vsub.f32 %v584_v37, %v588_v48 }
 0x348   :  { %v594_v52 = vmul.f32 1.442695, %v592_v49 }
 0x349   :  { %v591_v50 = vpop.xlane.xlu0 %590 }
 0x34a   :  { %v593_v51 = vsub.f32 %v585_v39, %v591_v50 }
 0x34c   :  { %v596_v53 = vmul.f32 1.442695, %v593_v51 }
 0x34d   :  { %v2618_v54 = vpop.permute.xlu0 %2617 }
 0x34e   :  { %2648 = vpow2.f32 %v596_v53  ;;  %v2620_v55 = vunpack.i.h.bf16 %v2618_v54  ;;  %v2619_v56 = vunpack.i.l.bf16 %v2618_v54 }
 0x34f   :  { %2650 = vpow2.f32 %v594_v52  ;;  %v2012_v52 = vld [vmem:[%s3590_s9] ss:$0 sm:$0xff] }
 0x350   :  { %v2440_v57 = vpack.c.bf16 %v2620_v55, %v2619_v56 }
 0x352   :  { %2442 = vmatprep.subr.msk.bf16.mxu1 %vm3361_vm2, %v2440_v57 }
 0x358   :  { %v2649_v58 = vpop.eup %2648 }
 0x359   :  { %v601_v59 = vsel %vm496_vm1, %v2649_v58, 0.0  ;;  %v2651_v60 = vpop.eup %2650 }
 0x35a   :  { %602 = vadd.xlane.f32.xlu1 %v601_v59  ;;  %v598_v61 = vsel %vm496_vm1, %v2651_v60, 0.0 }
 0x35e   :  { %599 = vadd.xlane.f32.xlu1 %v598_v61 }
 0x36f   :  { %693 = vrot.lane.b32.xlu1 %v321_v32, %s3009_s22 }
 0x3e7   :  { %v603_v63 = vpop.xlane.xlu1 %602 }
 0x3e8   :  { %2652 = vrcp.f32 %v603_v63 }
 0x3eb   :  { %v600_v0 = vpop.xlane.xlu1 %599 }
 0x3ec   :  { %2654 = vrcp.f32 %v600_v0 }
 0x3ef   :  { %v694_v8 = vpop.permute.xlu1 %693 }
 0x3f2   :  { %v2653_v1 = vpop.eup %2652 }
 0x3f3   :  { %v607_v3 = vmul.f32 %v2653_v1, %v2649_v58 }
 0x3f5   :  { %v609_v7 = vsel %vm230_vm4, %v607_v3, 0.0 }
 0x3f6   :  { %v2655_v2 = vpop.eup %2654 }
 0x3f7   :  { %v605_v4 = vmul.f32 %v2655_v2, %v2651_v60 }
 0x3f9   :  { %v608_v6 = vsel %vm229_vm3, %v605_v4, 0.0 }
 0x3fa   :  { %2227 = vmatprep.mubr.msk.f32.mxu1 %vm496_vm1, %v608_v6 }
 0x3fb   :  { %2228 = vmatmul.mubr.msk.f32.vlgmr.msra.gmra.mrb[6].mxu1 %vm496_vm1, %v609_v7  ;;  %v1047_v7 = vld [vmem:[%s3593_s12 + $0x8] sm:$0xff] }
 0x3fc   :  { %2445 = vmatpush3.bf16.xpose.msk.msra.mxu1 %vm3361_vm2, %v2440_v57  ;;  %2234 = vmatprep.mubr.msk.f32.mxu1 %vm496_vm1, %v692_v62 }
 0x403   :  { %2235 = vmatmul.mubr.msk.f32.vlgmr.msra.gmra.mrb[8].mxu1 %vm496_vm1, %v694_v8 }
 0x4ce   :  { %v2229_v9 = vpop.f32.mrb[6].mxu1 }
 0x4cf   :  { %v682_v10 = vpop.f32.mrb[7].mxu1 }
 0x4d6   :  { %v2236_v11 = vpop.f32.mrb[8].mxu1 }
 0x4d7   :  { %v783_v13 = vsel %vm230_vm4, %v2236_v11, -3.4028235e+38  ;;  %v773_v14 = vpop.f32.mrb[9].mxu1 }
 0x4d8   :  { %v782_v15 = vsel %vm229_vm3, %v773_v14, -3.4028235e+38  ;;  %v787_v16 = vsel %vm496_vm1, %v783_v13, -inf }
 0x4d9   :  { %788 = vmax.xlane.f32.xlu0 %v787_v16  ;;  %v784_v17 = vsel %vm496_vm1, %v782_v15, -inf }
 0x4da   :  { %785 = vmax.xlane.f32.xlu1 %v784_v17 }
 0x4eb   :  { %2622 = vrot.lane.b32.xlu1 %v2621_v46, %s3009_s22  ;;  %v910_v46 = vld [vmem:[#allocation11 + $0x18] sm:$0xff]  ;;  %s3013_s22 = smov 96  }
 0x4ec   :  { %v2454_v47 = vpack.c.bf16 %v910_v46, %v909_v44  ;;  %v2639_v44 = vld [vmem:[#allocation14 + $0x18] sm:$0xff]   ;;  %v2641_v46 = vld [vmem:[#allocation14 + $0x20] sm:$0xff]  }
 0x566   :  { %v789_v18 = vpop.xlane.xlu0 %788 }
 0x567   :  { %v791_v19 = vsub.f32 %v783_v13, %v789_v18  ;;  %v786_v20 = vpop.xlane.xlu1 %785  ;;  %v2628_v13 = vld [vmem:[#allocation13 + $0x4] ss:$8 sps:$4 sm:$0xff]  }
 0x568   :  { %v790_v21 = vsub.f32 %v782_v15, %v786_v20 }
 0x569   :  { %v794_v22 = vmul.f32 1.442695, %v791_v19 }
 0x56a   :  { %v792_v23 = vmul.f32 1.442695, %v790_v21  ;;  %v2015_v21 = vld [vmem:[%s3591_s10] ss:$0 sm:$0xff] }
 0x56b   :  { %v2623_v24 = vpop.permute.xlu1 %2622 }
 0x56c   :  { %2656 = vpow2.f32 %v792_v23  ;;  %v2625_v25 = vunpack.i.h.bf16 %v2623_v24  ;;  %v2624_v26 = vunpack.i.l.bf16 %v2623_v24 }
 0x56d   :  { %2658 = vpow2.f32 %v794_v22 }
 0x56e   :  { %v2446_v27 = vpack.c.bf16 %v2625_v25, %v2624_v26  ;;  %v2016_v25 = vld [vmem:[%s3592_s11] ss:$0 sm:$0xff] }
 0x570   :  { %2447 = vmatprep.subr.bf16.mxu0 %v2446_v27 }
 0x571   :  { %2449 = vmatpush3.bf16.msra.mxu0 %v2446_v27 }
 0x572   :  { %2451 = vmatprep.subr.bf16.mxu0 %v2450_v45 }
 0x576   :  { %v2657_v28 = vpop.eup %2656 }
 0x577   :  { %v796_v29 = vsel %vm496_vm1, %v2657_v28, 0.0  ;;  %v2659_v30 = vpop.eup %2658 }
 0x578   :  { %797 = vadd.xlane.f32.xlu0 %v796_v29  ;;  %v799_v31 = vsel %vm496_vm1, %v2659_v30, 0.0  ;;  %v2626_v29 = vld [vmem:[#allocation13] ss:$8 sps:$4 sm:$0xff]  }
 0x57c   :  { %800 = vadd.xlane.f32.xlu0 %v799_v31  ;;  %v2631_v31 = vld [vmem:[#allocation13 + $0x14] ss:$8 sps:$4 sm:$0xff]  }
 0x605   :  { %v798_v32 = vpop.xlane.xlu0 %797 }
 0x606   :  { %2660 = vrcp.f32 %v798_v32  ;;  %v2629_v32 = vld [vmem:[#allocation13 + $0x10] ss:$8 sps:$4 sm:$0xff]  }
 0x609   :  { %v801_v35 = vpop.xlane.xlu0 %800 }
 0x60a   :  { %2662 = vrcp.f32 %v801_v35  ;;  %v3011_v35 = vmov 0  }
 0x610   :  { %v2661_v36 = vpop.eup %2660 }
 0x611   :  { %v803_v37 = vmul.f32 %v2661_v36, %v2657_v28 }
 0x613   :  { %v806_v38 = vsel %vm229_vm3, %v803_v37, 0.0  ;;  %v2632_v37 = vld [vmem:[#allocation14 + $0x40] sm:$0xff]   ;;  %vm1658_vm3 = vcmask 523264  }
 0x614   :  { %v2663_v39 = vpop.eup %2662  ;;  %2241 = vmatprep.mubr.msk.f32.mxu0 %vm496_vm1, %v806_v38  ;;  %v2633_v38 = vld [vmem:[#allocation14] sm:$0xff]  }
 0x615   :  { %v805_v40 = vmul.f32 %v2663_v39, %v2659_v30  ;;  %v2634_v39 = vld [vmem:[#allocation14 + $0x48] sm:$0xff]  }
 0x617   :  { %v807_v41 = vsel %vm230_vm4, %v805_v40, 0.0  ;;  %v2635_v40 = vld [vmem:[#allocation14 + $0x8] sm:$0xff]   ;;  %vm1661_vm4 = vcmask 785408  }
 0x618   :  { %2242 = vmatmul.mubr.msk.f32.vlgmr.msra.gmra.mrb[2].mxu0 %vm496_vm1, %v807_v41  ;;  %v2636_v41 = vld [vmem:[#allocation14 + $0x50] sm:$0xff]  }
 0x619   :  { %2453 = vmatpush3.bf16.msra.mxu0 %v2450_v45  ;;  %v2640_v45 = vld [vmem:[#allocation14 + $0x60] sm:$0xff]  }
 0x61a   :  { %2455 = vmatprep.subr.bf16.mxu0 %v2454_v47 }
 0x61d   :  { %2457 = vmatpush3.bf16.msra.mxu0 %v2454_v47  ;;  %v2642_v47 = vld [vmem:[#allocation14 + $0x68] sm:$0xff]  }
 0x6eb   :  { %v2243_v33 = vpop.f32.mrb[2].mxu0 }
 0x6ec   :  { %901 = vrot.lane.b32.xlu1 %v2243_v33, %s3010_s28  ;;  %v888_v48 = vpop.f32.mrb[3].mxu0  ;;  %v2643_v33 = vld [vmem:[#allocation14 + $0x28] sm:$0xff]  }
 0x6ed   :  { %899 = vrot.lane.b32.xlu0 %v888_v48, %s3010_s28  ;;  %v2644_v48 = vld [vmem:[#allocation14 + $0x70] sm:$0xff]   ;;  %s2934_s28 = scalar_lea.vmem %s1971_s24, 256 }
 0x6ee   :  { %p2935_p4 = scmp.ne.s32.totalorder %s1971_s24, %s2934_s28  ;;  %p2940_p6 = scmp.lt.s32.totalorder %s2934_s28, %s2934_s28 }
 0x6f0   :  { %p2941_p7 = por %p2940_p6, %p2939_p5 }
 0x6f2   :  { %p2942_p8 = pnand %p2941_p7, %p2935_p4 }
 0x75e   :  { %v902_v49 = vpop.permute.xlu1 %901 }
 0x75f   :  { %v900_v34 = vpop.permute.xlu0 %899  ;;  %v906_v51 = vsel %vm496_vm1, %v2229_v9, %v902_v49  ;;  %v1048_v9 = vld [vmem:[%s3593_s12 + $0x10] sm:$0xff] }
 0x760   :  { %v905_v50 = vsel %vm496_vm1, %v682_v10, %v900_v34  ;;  %v1049_v10 = vld [vmem:[%s3593_s12 + $0x18] sm:$0xff]  ;;  %v2645_v49 = vld [vmem:[#allocation14 + $0x30] sm:$0xff]  }
 0x761   :  { %2252 = vmatprep.mubr.msk.f32.mxu0 %vm242_vm0, %v905_v50  ;;  %v2462_v11 = vpack.c.bf16 %v1049_v10, %v1048_v9  ;;  %v2646_v34 = vld [vmem:[#allocation14 + $0x78] sm:$0xff]  }
 0x762   :  { %2253 = vmatmul.mubr.msk.f32.vlgmr.msra.gmra.mrb[4].mxu0 %vm242_vm0, %v906_v51  ;;  %v2647_v50 = vld [vmem:[#allocation14 + $0x38] sm:$0xff]   ;;  %v1133_v51 = vlaneseq }
 0x835   :  { %v2254_v53 = vpop.f32.mrb[4].mxu0 }
 0x836   :  { %v996_v54 = vadd.f32 %v2254_v53, %v2012_v52  ;;  %v990_v55 = vpop.f32.mrb[5].mxu0  ;;  %v1349_v53 = vshrl.u32 %v1133_v51, 7 }
 0x837   :  { %v991_v56 = vadd.f32 %v2012_v52, %v990_v55  ;;  %v3458_v52 = vand.u32 127, %v1133_v51 }
 0x838   :  { %v1000_v57 = vadd.f32 %v996_v54, %v3341_v12 }
 0x839   :  { %v999_v58 = vadd.f32 %v991_v56, %v3335_v5  ;;  %v1046_v5 = vld [vmem:[%s3593_s12] sm:$0xff]  ;;  %vm1135_vm5 = vcmp.lt.s32.totalorder %v3458_v52, 4 }
 0x83a   :  { %v1006_v59 = vsel %vm242_vm0, %v1000_v57, 0.0  ;;  %v2458_v8 = vpack.c.bf16 %v1047_v7, %v1046_v5 }
 0x83b   :  { %1007 = vadd.xlane.f32.xlu0 %v1006_v59  ;;  %v1003_v60 = vsel %vm242_vm0, %v999_v58, 0.0  ;;  %v1346_v59 = vld [vmem:[%s3595_s14] sm:$0x3]  ;;  %s3012_s14 = smov 32  }
 0x83c   :  { %1004 = vadd.xlane.f32.xlu1 %v1003_v60  ;;  %2459 = vmatprep.subr.bf16.mxu1 %v2458_v8  ;;  %v1354_v60 = vsub.s32 1, %v1349_v53 }
 0x83d   :  { %2461 = vmatpush3.bf16.msra.mxu1 %v2458_v8 }
 0x83e   :  { %2463 = vmatprep.subr.bf16.mxu1 %v2462_v11 }
 0x841   :  { %2465 = vmatpush3.bf16.msra.mxu1 %v2462_v11 }
 0x842   :  { %1381 = vmatprep.subr.bf16.mxu1 %v2628_v13 }
 0x8c8   :  { %v1008_v61 = vpop.xlane.xlu0 %1007 }
 0x8c9   :  { %v1011_v62 = vmul.f32 0.03125, %v1008_v61  ;;  %v1005_v63 = vpop.xlane.xlu1 %1004 }
 0x8ca   :  { %v1010_v0 = vmul.f32 0.03125, %v1005_v63 }
 0x8cb   :  { %v1013_v1 = vsub.f32 %v1000_v57, %v1011_v62  ;;  %v1350_v57 = vsub.s32 0, %v1349_v53  ;;  %v1355_v62 = vrot.slane %v1346_v59, %v1354_v60 }
 0x8cc   :  { %v1012_v2 = vsub.f32 %v999_v58, %v1010_v0 }
 0x8cd   :  { %v1015_v3 = vmul.f32 %v1013_v1, %v1013_v1  ;;  %v1351_v61 = vrot.slane %v1346_v59, %v1350_v57 }
 0x8ce   :  { %v1014_v4 = vmul.f32 %v1012_v2, %v1012_v2 }
 0x8cf   :  { %v1019_v6 = vsel %vm242_vm0, %v1015_v3, 0.0 }
 0x8d0   :  { %1020 = vadd.xlane.f32.xlu1 %v1019_v6  ;;  %v1016_v12 = vsel %vm242_vm0, %v1014_v4, 0.0 }
 0x8d1   :  { %1017 = vadd.xlane.f32.xlu0 %v1016_v12 }
 0x95d   :  { %v1021_v14 = vpop.xlane.xlu1 %1020 }
 0x95e   :  { %v1023_v15 = vmul.f32 0.03125, %v1021_v14  ;;  %v1018_v16 = vpop.xlane.xlu0 %1017 }
 0x95f   :  { %v1022_v17 = vmul.f32 0.03125, %v1018_v16 }
 0x960   :  { %v1025_v18 = vadd.f32 1e-07, %v1023_v15 }
 0x961   :  { %v1024_v19 = vadd.f32 1e-07, %v1022_v17 }
 0x962   :  { %2664 = vrsqrt.f32 %v1025_v18 }
 0x963   :  { %2666 = vrsqrt.f32 %v1024_v19 }
 0x96c   :  { %v2665_v20 = vpop.eup %2664 }
 0x96d   :  { %v2667_v22 = vpop.eup %2666  ;;  %v1029_v23 = vmul.f32 %v2665_v20, %v1013_v1 }
 0x96e   :  { %v1028_v24 = vmul.f32 %v2667_v22, %v1012_v2 }
 0x96f   :  { %v1037_v26 = vmul.f32 %v2015_v21, %v1029_v23 }
 0x970   :  { %v1036_v27 = vmul.f32 %v2015_v21, %v1028_v24 }
 0x971   :  { %v3449_v30 = vadd.f32 %v2016_v25, %v1037_v26 }
 0x972   :  { %v3447_v28 = vadd.f32 %v2016_v25, %v1036_v27 }
 0x974   :  { %2263 = vmatprep.mubr.msk.f32.mxu1 %vm242_vm0, %v3447_v28  ;;  %v1341_v36 = vpack.c.bf16 %v3449_v30, %v3447_v28 }
 0x975   :  { %2264 = vmatmul.mubr.msk.f32.vlgmr.msra.gmra.mrb[10].mxu1 %vm242_vm0, %v3449_v30 }
 0x976   :  { %1382 = vmatpush1.bf16.msra.mxu1 %v2626_v29  ;;  %1413 = vmatprep.mubr.bf16.mxu1 %v3011_v35 }
 0x977   :  { %1383 = vmatprep.subr.bf16.mxu1 %v2631_v31 }
 0x97a   :  { %1384 = vmatpush1.bf16.msra.mxu1 %v2629_v32 }
 0x97b   :  { %2107 = vmatprep.subr.bf16.mxu1 %v2632_v37 }
 0x97d   :  { %2023 = vmatmul.mubr.msk.bf16.vlgmr.msra.gmra.mrb[12].mxu1 %vm242_vm0, %v1341_v36 }
 0x97e   :  { %2108 = vmatpush3.bf16.msra.mxu1 %v2633_v38 }
 0x97f   :  { %2109 = vmatprep.subr.bf16.mxu1 %v2634_v39 }
 0x982   :  { %2110 = vmatpush3.bf16.msra.mxu1 %v2635_v40 }
 0x983   :  { %2111 = vmatprep.subr.bf16.mxu1 %v2636_v41 }
 0x986   :  { %2112 = vmatpush3.bf16.msra.mxu1 %v2637_v42 }
 0x987   :  { %2113 = vmatprep.subr.bf16.mxu1 %v2638_v43 }
 0x98a   :  { %2114 = vmatpush3.bf16.msra.mxu1 %v2639_v44 }
 0x98b   :  { %2115 = vmatprep.subr.bf16.mxu1 %v2640_v45 }
 0x98e   :  { %2116 = vmatpush3.bf16.msra.mxu1 %v2641_v46 }
 0x98f   :  { %2117 = vmatprep.subr.bf16.mxu1 %v2642_v47 }
 0x992   :  { %2118 = vmatpush3.bf16.msra.mxu1 %v2643_v33 }
 0x993   :  { %2119 = vmatprep.subr.bf16.mxu1 %v2644_v48 }
 0x996   :  { %2120 = vmatpush3.bf16.msra.mxu1 %v2645_v49 }
 0x997   :  { %2121 = vmatprep.subr.bf16.mxu1 %v2646_v34 }
 0x99a   :  { %2122 = vmatpush3.bf16.msra.mxu1 %v2647_v50 }
 0xa48   :  { %v2265_v54 = vpop.f32.mrb[10].mxu1 }
 0xa49   :  { %1132 = vst [vmem:[#allocation21 + $0x8] sm:$0xff] %v2265_v54  ;;  %v1122_v55 = vpop.f32.mrb[11].mxu1  ;;  %v3461_v56 = vsel %vm1135_vm5, %v2265_v54, -3.4028235e+38 }
 0xa4a   :  { %1131 = vst [vmem:[#allocation21] sm:$0xff] %v1122_v55  ;;  %1140 = vmax.xlane.f32.xlu1 %v3461_v56  ;;  %v3464_v58 = vsel %vm1135_vm5, %v1122_v55, -3.4028235e+38 }
 0xa4b   :  { %1138 = vmax.xlane.f32.xlu0 %v3464_v58 }
 0xa50   :  { %v1415_v63 = vpop.f32.mrb[12].mxu1 }
 0xa51   :  { %v1416_v0 = vadd.f32 %v1415_v63, %v1351_v61  ;;  %v1417_v1 = vpop.f32.mrb[13].mxu1 }
 0xa52   :  { %v1418_v2 = vadd.f32 %v1417_v1, %v1355_v62  ;;  %v1419_v3 = vpop.f32.mrb[14].mxu1 }
 0xa53   :  { %v1428_v4 = vmul.f32 0.044715, %v1416_v0  ;;  %v1420_v6 = vadd.f32 %v1419_v3, %v1351_v61  ;;  %v1421_v12 = vpop.f32.mrb[15].mxu1  ;;  %v1424_v37 = vmul.f32 0.5, %v1416_v0 }
 0xa54   :  { %v1429_v5 = vmul.f32 0.044715, %v1418_v2  ;;  %v1422_v7 = vadd.f32 %v1421_v12, %v1355_v62  ;;  %v1425_v40 = vmul.f32 0.5, %v1418_v2 }
 0xa55   :  { %v1432_v8 = vmul.f32 %v1428_v4, %v1416_v0  ;;  %v1430_v9 = vmul.f32 0.044715, %v1420_v6  ;;  %v1426_v38 = vmul.f32 0.5, %v1420_v6 }
 0xa56   :  { %v1433_v10 = vmul.f32 %v1429_v5, %v1418_v2  ;;  %v1431_v11 = vmul.f32 0.044715, %v1422_v7  ;;  %v1427_v41 = vmul.f32 0.5, %v1422_v7 }
 0xa57   :  { %v1436_v13 = vmul.f32 %v1432_v8, %v1416_v0  ;;  %v1434_v14 = vmul.f32 %v1430_v9, %v1420_v6 }
 0xa58   :  { %v1437_v15 = vmul.f32 %v1433_v10, %v1418_v2  ;;  %v1435_v16 = vmul.f32 %v1431_v11, %v1422_v7 }
 0xa59   :  { %v1440_v17 = vadd.f32 %v1436_v13, %v1416_v0  ;;  %v1438_v18 = vmul.f32 %v1434_v14, %v1420_v6 }
 0xa5a   :  { %v1439_v19 = vmul.f32 %v1435_v16, %v1422_v7  ;;  %v1441_v20 = vadd.f32 %v1437_v15, %v1418_v2 }
 0xa5b   :  { %v1444_v21 = vmul.f32 0.7978846, %v1440_v17  ;;  %v1442_v22 = vadd.f32 %v1438_v18, %v1420_v6 }
 0xa5c   :  { %v1443_v23 = vadd.f32 %v1439_v19, %v1422_v7  ;;  %v1445_v24 = vmul.f32 0.7978846, %v1441_v20 }
 0xa5d   :  { %2668 = vtanh.f32 %v1444_v21  ;;  %v1446_v25 = vmul.f32 0.7978846, %v1442_v22 }
 0xa5e   :  { %v1447_v26 = vmul.f32 0.7978846, %v1443_v23  ;;  %2670 = vtanh.f32 %v1445_v24 }
 0xa5f   :  { %2672 = vtanh.f32 %v1446_v25 }
 0xa60   :  { %2674 = vtanh.f32 %v1447_v26 }
 0xa67   :  { %v2669_v27 = vpop.eup %2668 }
 0xa68   :  { %v2671_v29 = vpop.eup %2670  ;;  %v1452_v31 = vadd.f32 1.0, %v2669_v27 }
 0xa69   :  { %v2673_v32 = vpop.eup %2672  ;;  %v1453_v35 = vadd.f32 1.0, %v2671_v29 }
 0xa6a   :  { %v2675_v36 = vpop.eup %2674  ;;  %v1454_v39 = vadd.f32 1.0, %v2673_v32  ;;  %v1456_v43 = vmul.f32 %v1452_v31, %v1424_v37 }
 0xa6b   :  { %v1455_v42 = vadd.f32 1.0, %v2675_v36  ;;  %v1457_v45 = vmul.f32 %v1453_v35, %v1425_v40 }
 0xa6c   :  { %v1458_v44 = vmul.f32 %v1454_v39, %v1426_v38 }
 0xa6d   :  { %v1459_v46 = vmul.f32 %v1455_v42, %v1427_v41 }
 0xa6e   :  { %v1460_v47 = vpack.c.bf16 %v1458_v44, %v1456_v43 }
 0xa6f   :  { %v1461_v33 = vpack.c.bf16 %v1459_v46, %v1457_v45 }
 0xa71   :  { %1629 = vmatprep.mubr.bf16.mxu1 %v1461_v33 }
 0xa72   :  { %1630 = vmatmul.mubr.bf16.vlgmr.msra.gmra.mrb[16].mxu1 %v1460_v47 }
 0xad7   :  { %v1141_v48 = vpop.xlane.xlu1 %1140 }
 0xad8   :  { %v1143_v49 = vsub.f32 %v3461_v56, %v1141_v48  ;;  %v1139_v34 = vpop.xlane.xlu0 %1138 }
 0xad9   :  { %v1142_v50 = vsub.f32 %v3464_v58, %v1139_v34 }
 0xada   :  { %v1146_v51 = vmul.f32 1.442695, %v1143_v49 }
 0xadb   :  { %v1144_v53 = vmul.f32 1.442695, %v1142_v50  ;;  %v1250_v50 = vld [vmem:[#allocation17] sm:$0xff] }
 0xadc   :  { %2676 = vpow2.f32 %v1146_v51  ;;  %v1251_v51 = vld [vmem:[#allocation17 + $0x8] sm:$0xff] }
 0xadd   :  { %2678 = vpow2.f32 %v1144_v53  ;;  %v1252_v53 = vld [vmem:[#allocation17 + $0x10] sm:$0xff] }
 0xae6   :  { %v2677_v54 = vpop.eup %2676 }
 0xae7   :  { %v2679_v55 = vpop.eup %2678  ;;  %1150 = vadd.xlane.f32.xlu1 %v2677_v54 }
 0xae8   :  { %1148 = vadd.xlane.f32.xlu0 %v2679_v55 }
 0xb45   :  { %v2123_v57 = vpop.f32.mrb[16].mxu1 }
 0xb46   :  { %v2124_v59 = vpop.f32.mrb[17].mxu1 }
 0xb47   :  { %v3472_v60 = vadd.f32 %v2124_v59, %v2123_v57  ;;  %v2126_v61 = vpop.f32.mrb[18].mxu1  ;;  %v1254_v59 = vld [vmem:[#allocation17 + $0x20] sm:$0xff] }
 0xb48   :  { %v2127_v62 = vpop.f32.mrb[19].mxu1 }
 0xb49   :  { %v3474_v63 = vadd.f32 %v2127_v62, %v2126_v61  ;;  %v1255_v61 = vld [vmem:[#allocation17 + $0x28] sm:$0xff] }
 0xb4a   :  { %v2474_v62 = vpack.c.bf16 %v1255_v61, %v1254_v59 }
 0xb74   :  { %v1151_v56 = vpop.xlane.xlu1 %1150 }
 0xb75   :  { %2680 = vrcp.f32 %v1151_v56  ;;  %v1149_v0 = vpop.xlane.xlu0 %1148  ;;  %v1256_v56 = vld [vmem:[#allocation17 + $0x30] sm:$0xff] }
 0xb76   :  { %2682 = vrcp.f32 %v1149_v0  ;;  %v1257_v0 = vld [vmem:[#allocation17 + $0x38] sm:$0xff] }
 0xb7f   :  { %v2681_v58 = vpop.eup %2680 }
 0xb80   :  { %v2683_v1 = vpop.eup %2682  ;;  %v3476_v2 = vmul.f32 %v2681_v58, %v2677_v54  ;;  %v2466_v54 = vpack.c.bf16 %v1251_v51, %v1250_v50  ;;  %v2478_v58 = vpack.c.bf16 %v1257_v0, %v1256_v56  ;;  %v1680_v51 = vld [vmem:[#allocation16 + $0x70] sm:$0xff] }
 0xb81   :  { %v3478_v3 = vmul.f32 %v2683_v1, %v2679_v55  ;;  %v1253_v55 = vld [vmem:[#allocation17 + $0x18] sm:$0xff]  ;;  %v1258_v1 = vld [vmem:[#allocation17 + $0x40] sm:$0xff] }
 0xb82   :  { %1158 = vmax.xlane.f32.xlu1 %v3476_v2  ;;  %v2470_v57 = vpack.c.bf16 %v1253_v55, %v1252_v53  ;;  %2467 = vmatprep.subr.bf16.mxu0 %v2466_v54  ;;  %v1681_v53 = vld [vmem:[#allocation16 + $0x78] sm:$0xff] }
 0xb83   :  { %1156 = vmax.xlane.f32.xlu0 %v3478_v3  ;;  %2469 = vmatpush3.bf16.msra.mxu0 %v2466_v54  ;;  %v2526_v54 = vpack.c.bf16 %v1681_v53, %v1680_v51 }
 0xb84   :  { %2471 = vmatprep.subr.bf16.mxu0 %v2470_v57 }
 0xb87   :  { %2473 = vmatpush3.bf16.msra.mxu0 %v2470_v57 }
 0xb88   :  { %2475 = vmatprep.subr.bf16.mxu0 %v2474_v62 }
 0xb8b   :  { %2477 = vmatpush3.bf16.msra.mxu0 %v2474_v62 }
 0xb8c   :  { %2479 = vmatprep.subr.bf16.mxu0 %v2478_v58 }
 0xb8f   :  { %2481 = vmatpush3.bf16.msra.mxu0 %v2478_v58 }
 0xc0f   :  { %v1159_v4 = vpop.xlane.xlu1 %1158 }
 0xc10   :  { %vm1161_vm6 = vcmp.ge.f32.partialorder %v3476_v2, %v1159_v4  ;;  %v1157_v6 = vpop.xlane.xlu0 %1156  ;;  %v1259_v4 = vld [vmem:[#allocation17 + $0x48] sm:$0xff] }
 0xc11   :  { %v1163_v12 = vsel %vm1161_vm6, %v3458_v52, 128  ;;  %vm1160_vm7 = vcmp.ge.f32.partialorder %v3478_v3, %v1157_v6  ;;  %v2482_v6 = vpack.c.bf16 %v1259_v4, %v1258_v1  ;;  %v2024_v1 = vld [vmem:[%s3597_s16] ss:$0 sm:$0xff] }
 0xc12   :  { %v1162_v5 = vsel %vm1160_vm7, %v3458_v52, 128  ;;  %v1179_v7 = vshra.s32 %v1163_v12, 16  ;;  %v1178_v11 = vand.u32 65535, %v1163_v12 }
 0xc13   :  { %v1165_v8 = vshra.s32 %v1162_v5, 16  ;;  %v1164_v13 = vand.u32 65535, %v1162_v5  ;;  %2483 = vmatprep.subr.bf16.mxu0 %v2482_v6 }
 0xc14   :  { %v1181_v9 = vcvt.s32.f32 %v1179_v7  ;;  %v1180_v15 = vcvt.s32.f32 %v1178_v11  ;;  %2485 = vmatpush3.bf16.msra.mxu0 %v2482_v6 }
 0xc15   :  { %v1167_v10 = vcvt.s32.f32 %v1165_v8  ;;  %v1166_v17 = vcvt.s32.f32 %v1164_v13 }
 0xc16   :  { %1182 = vmin.xlane.f32.xlu1 %v1181_v9 }
 0xc17   :  { %1168 = vmin.xlane.f32.xlu0 %v1167_v10 }
 0xca3   :  { %v1183_v14 = vpop.xlane.xlu1 %1182 }
 0xca4   :  { %v1169_v16 = vpop.xlane.xlu0 %1168  ;;  %vm1184_vm8 = vcmp.eq.f32.partialorder %v1181_v9, %v1183_v14  ;;  %v1189_v20 = vcvt.f32.s32 %v1183_v14 }
 0xca5   :  { %v1185_v18 = vsel %vm1184_vm8, %v1180_v15, inf  ;;  %vm1170_vm9 = vcmp.eq.f32.partialorder %v1167_v10, %v1169_v16  ;;  %v1175_v21 = vcvt.f32.s32 %v1169_v16 }
 0xca6   :  { %1186 = vmin.xlane.f32.xlu1 %v1185_v18  ;;  %v1171_v19 = vsel %vm1170_vm9, %v1166_v17, inf  ;;  %v1190_v23 = vshll.u32 %v1189_v20, 16 }
 0xca7   :  { %1172 = vmin.xlane.f32.xlu0 %v1171_v19  ;;  %v1176_v26 = vshll.u32 %v1175_v21, 16 }
 0xd33   :  { %v1187_v22 = vpop.xlane.xlu1 %1186 }
 0xd34   :  { %v1188_v24 = vcvt.f32.s32 %v1187_v22  ;;  %v1173_v25 = vpop.xlane.xlu0 %1172  ;;  %v1260_v22 = vld [vmem:[#allocation17 + $0x50] sm:$0xff] }
 0xd35   :  { %v1174_v27 = vcvt.f32.s32 %v1173_v25  ;;  %v1263_v25 = vld [vmem:[#allocation17 + $0x68] sm:$0xff] }
 0xd36   :  { %v3486_v29 = vadd.s32 %v1190_v23, %v1188_v24  ;;  %v1261_v23 = vld [vmem:[#allocation17 + $0x58] sm:$0xff]  ;;  %v1262_v24 = vld [vmem:[#allocation17 + $0x60] sm:$0xff] }
 0xd37   :  { %v3488_v31 = vadd.s32 %v1176_v26, %v1174_v27  ;;  %v1265_v26 = vld [vmem:[#allocation17 + $0x78] sm:$0xff] }
 0xd38   :  { %vm1193_vm10 = vcmp.eq.s32.totalorder %v3458_v52, %v3486_v29  ;;  %v1666_v29 = vld [vmem:[#allocation16] sm:$0xff] }
 0xd39   :  { %v1199_v32 = vsel %vm1193_vm10, -1.0, %v3476_v2  ;;  %vm1192_vm11 = vcmp.eq.s32.totalorder %v3458_v52, %v3488_v31  ;;  %v1195_v16 = vsel %vm1193_vm10, %v3476_v2, 0.0  ;;  %v1667_v31 = vld [vmem:[#allocation16 + $0x8] sm:$0xff] }
 0xd3a   :  { %1202 = vmax.xlane.f32.xlu1 %v1199_v32  ;;  %v1198_v35 = vsel %vm1192_vm11, -1.0, %v3478_v3  ;;  %v1194_v19 = vsel %vm1192_vm11, %v3478_v3, 0.0 }
 0xd3b   :  { %1200 = vmax.xlane.f32.xlu0 %v1198_v35 }
 0xdc7   :  { %v1203_v36 = vpop.xlane.xlu1 %1202 }
 0xdc8   :  { %vm1205_vm12 = vcmp.ge.f32.partialorder %v1199_v32, %v1203_v36  ;;  %v1201_v37 = vpop.xlane.xlu0 %1200  ;;  %v2498_v32 = vpack.c.bf16 %v1667_v31, %v1666_v29  ;;  %v1669_v36 = vld [vmem:[#allocation16 + $0x18] sm:$0xff]  ;;  %v1866_v29 = vld [vmem:[#allocation19 + $0x30] sm:$0xff] }
 0xdc9   :  { %v1207_v38 = vsel %vm1205_vm12, %v3458_v52, 128  ;;  %vm1204_vm13 = vcmp.ge.f32.partialorder %v1198_v35, %v1201_v37  ;;  %v1668_v35 = vld [vmem:[#allocation16 + $0x10] sm:$0xff]  ;;  %v1867_v31 = vld [vmem:[#allocation19 + $0x38] sm:$0xff] }
 0xdca   :  { %v1206_v39 = vsel %vm1204_vm13, %v3458_v52, 128  ;;  %v1223_v40 = vshra.s32 %v1207_v38, 16  ;;  %v1222_v44 = vand.u32 65535, %v1207_v38  ;;  %2531 = vmatprep.subr.bf16.mxu1 %v2498_v32  ;;  %v2502_v37 = vpack.c.bf16 %v1669_v36, %v1668_v35  ;;  %v1670_v38 = vld [vmem:[#allocation16 + $0x20] sm:$0xff]  ;;  %v1869_v36 = vld [vmem:[#allocation19 + $0x48] sm:$0xff] }
 0xdcb   :  { %v1209_v41 = vshra.s32 %v1206_v39, 16  ;;  %v1208_v45 = vand.u32 65535, %v1206_v39  ;;  %2533 = vmatpush3.bf16.msra.mxu1 %v2498_v32  ;;  %v1671_v39 = vld [vmem:[#allocation16 + $0x28] sm:$0xff]  ;;  %v1868_v35 = vld [vmem:[#allocation19 + $0x40] sm:$0xff] }
 0xdcc   :  { %v1225_v42 = vcvt.s32.f32 %v1223_v40  ;;  %v1224_v47 = vcvt.s32.f32 %v1222_v44  ;;  %2535 = vmatprep.subr.bf16.mxu1 %v2502_v37  ;;  %v2506_v40 = vpack.c.bf16 %v1671_v39, %v1670_v38  ;;  %v1674_v44 = vld [vmem:[#allocation16 + $0x40] sm:$0xff]  ;;  %v2578_v38 = vpack.c.bf16 %v1869_v36, %v1868_v35  ;;  %v1871_v39 = vld [vmem:[#allocation19 + $0x58] sm:$0xff] }
 0xdcd   :  { %v1211_v43 = vcvt.s32.f32 %v1209_v41  ;;  %v1210_v48 = vcvt.s32.f32 %v1208_v45  ;;  %v1672_v41 = vld [vmem:[#allocation16 + $0x30] sm:$0xff]  ;;  %v1675_v45 = vld [vmem:[#allocation16 + $0x48] sm:$0xff] }
 0xdce   :  { %1226 = vmin.xlane.f32.xlu1 %v1225_v42 }
 0xdcf   :  { %1212 = vmin.xlane.f32.xlu0 %v1211_v43  ;;  %2537 = vmatpush3.bf16.msra.mxu1 %v2502_v37 }
 0xdd0   :  { %2539 = vmatprep.subr.bf16.mxu1 %v2506_v40 }
 0xdd3   :  { %2541 = vmatpush3.bf16.msra.mxu1 %v2506_v40 }
 0xe5b   :  { %v1227_v46 = vpop.xlane.xlu1 %1226 }
 0xe5c   :  { %v1213_v33 = vpop.xlane.xlu0 %1212  ;;  %vm1228_vm14 = vcmp.eq.f32.partialorder %v1225_v42, %v1227_v46  ;;  %v1233_v12 = vcvt.f32.s32 %v1227_v46  ;;  %v1673_v42 = vld [vmem:[#allocation16 + $0x38] sm:$0xff]  ;;  %v2514_v46 = vpack.c.bf16 %v1675_v45, %v1674_v44  ;;  %v1874_v44 = vld [vmem:[#allocation19 + $0x70] sm:$0xff] }
 0xe5d   :  { %v1229_v49 = vsel %vm1228_vm14, %v1224_v47, inf  ;;  %vm1214_vm15 = vcmp.eq.f32.partialorder %v1211_v43, %v1213_v33  ;;  %v1219_v5 = vcvt.f32.s32 %v1213_v33  ;;  %v2510_v43 = vpack.c.bf16 %v1673_v42, %v1672_v41  ;;  %v1676_v47 = vld [vmem:[#allocation16 + $0x50] sm:$0xff]  ;;  %v1677_v33 = vld [vmem:[#allocation16 + $0x58] sm:$0xff]  ;;  %v1872_v41 = vld [vmem:[#allocation19 + $0x60] sm:$0xff] }
 0xe5e   :  { %1230 = vmin.xlane.f32.xlu1 %v1229_v49  ;;  %v1215_v34 = vsel %vm1214_vm15, %v1210_v48, inf  ;;  %v1234_v8 = vshll.u32 %v1233_v12, 16  ;;  %v2518_v48 = vpack.c.bf16 %v1677_v33, %v1676_v47  ;;  %v1678_v49 = vld [vmem:[#allocation16 + $0x60] sm:$0xff]  ;;  %v1873_v42 = vld [vmem:[#allocation19 + $0x68] sm:$0xff]  ;;  %v1875_v45 = vld [vmem:[#allocation19 + $0x78] sm:$0xff] }
 0xe5f   :  { %1216 = vmin.xlane.f32.xlu0 %v1215_v34  ;;  %v1220_v11 = vshll.u32 %v1219_v5, 16  ;;  %2543 = vmatprep.subr.bf16.mxu1 %v2510_v43  ;;  %v1679_v34 = vld [vmem:[#allocation16 + $0x68] sm:$0xff]  ;;  %v1632_v5 = vadd.f32 %v3472_v60, %v2024_v1 }
 0xe60   :  { %2545 = vmatpush3.bf16.msra.mxu1 %v2510_v43  ;;  %v2522_v50 = vpack.c.bf16 %v1679_v34, %v1678_v49 }
 0xe61   :  { %2547 = vmatprep.subr.bf16.mxu1 %v2514_v46 }
 0xe64   :  { %2549 = vmatpush3.bf16.msra.mxu1 %v2514_v46 }
 0xe65   :  { %2551 = vmatprep.subr.bf16.mxu1 %v2518_v48 }
 0xe68   :  { %2553 = vmatpush3.bf16.msra.mxu1 %v2518_v48 }
 0xe69   :  { %2555 = vmatprep.subr.bf16.mxu1 %v2522_v50 }
 0xe6c   :  { %2557 = vmatpush3.bf16.msra.mxu1 %v2522_v50 }
 0xe6d   :  { %2559 = vmatprep.subr.bf16.mxu1 %v2526_v54 }
 0xe70   :  { %2561 = vmatpush3.bf16.msra.mxu1 %v2526_v54 }
 0xeeb   :  { %v1231_v7 = vpop.xlane.xlu1 %1230 }
 0xeec   :  { %v1232_v9 = vcvt.f32.s32 %v1231_v7  ;;  %v1217_v10 = vpop.xlane.xlu0 %1216 }
 0xeed   :  { %v1218_v13 = vcvt.f32.s32 %v1217_v10 }
 0xeee   :  { %v1235_v14 = vadd.s32 %v1234_v8, %v1232_v9 }
 0xeef   :  { %v1221_v15 = vadd.s32 %v1220_v11, %v1218_v13 }
 0xef0   :  { %vm1237_vm1 = vcmp.eq.s32.totalorder %v3458_v52, %v1235_v14  ;;  %v1635_v14 = vadd.f32 %v3474_v63, %v2024_v1 }
 0xef1   :  { %v1239_v17 = vsel %vm1237_vm1, %v3476_v2, 0.0  ;;  %vm1236_vm2 = vcmp.eq.s32.totalorder %v3458_v52, %v1221_v15  ;;  %v2486_v2 = vpack.c.bf16 %v1261_v23, %v1260_v22  ;;  %v2490_v52 = vpack.c.bf16 %v1263_v25, %v1262_v24 }
 0xef2   :  { %v3511_v18 = vadd.f32 %v1239_v17, %v1195_v16  ;;  %v1238_v20 = vsel %vm1236_vm2, %v3478_v3, 0.0  ;;  %v1264_v3 = vld [vmem:[#allocation17 + $0x70] sm:$0xff]  ;;  %v1860_v16 = vld [vmem:[#allocation19] sm:$0xff]  ;;  %v1861_v17 = vld [vmem:[#allocation19 + $0x8] sm:$0xff] }
 0xef3   :  { %v3518_v21 = vadd.f32 %v1238_v20, %v1194_v19  ;;  %2487 = vmatprep.subr.bf16.mxu0 %v2486_v2  ;;  %v2494_v27 = vpack.c.bf16 %v1265_v26, %v1264_v3  ;;  %v2562_v19 = vpack.c.bf16 %v1861_v17, %v1860_v16  ;;  %v1863_v20 = vld [vmem:[#allocation19 + $0x18] sm:$0xff]  ;;  %v1864_v3 = vld [vmem:[#allocation19 + $0x20] sm:$0xff]  ;;  %v1865_v26 = vld [vmem:[#allocation19 + $0x28] sm:$0xff] }
 0xef4   :  { %1244 = vadd.xlane.f32.xlu1 %v3511_v18  ;;  %2489 = vmatpush3.bf16.msra.mxu0 %v2486_v2 }
 0xef5   :  { %1242 = vadd.xlane.f32.xlu0 %v3518_v21  ;;  %2491 = vmatprep.subr.bf16.mxu0 %v2490_v52 }
 0xef8   :  { %2493 = vmatpush3.bf16.msra.mxu0 %v2490_v52 }
 0xef9   :  { %2495 = vmatprep.subr.bf16.mxu0 %v2494_v27 }
 0xefc   :  { %2497 = vmatpush3.bf16.msra.mxu0 %v2494_v27  ;;  %v2570_v27 = vpack.c.bf16 %v1865_v26, %v1864_v3 }
 0xefd   :  { %2499 = vmatprep.subr.bf16.mxu0 %v2498_v32 }
 0xf05   :  { %1640 = vrot.lane.b32.xlu1 %v3449_v30, %s3012_s14 }
 0xf09   :  { %1644 = vrot.lane.b32.xlu1 %v3447_v28, %s3000_s8 }
 0xf0b   :  { %1638 = vrot.lane.b32.xlu0 %v3447_v28, %s3012_s14 }
 0xf0d   :  { %1646 = vrot.lane.b32.xlu1 %v3449_v30, %s3000_s8 }
 0xf0f   :  { %1650 = vrot.lane.b32.xlu0 %v3447_v28, %s3013_s22 }
 0xf11   :  { %1652 = vrot.lane.b32.xlu1 %v3449_v30, %s3013_s22 }
 0xf81   :  { %v1245_v55 = vpop.xlane.xlu1 %1244 }
 0xf82   :  { %2684 = vrcp.f32 %v1245_v55  ;;  %v1243_v57 = vpop.xlane.xlu0 %1242  ;;  %v2042_v55 = vld [vmem:[%s3599_s18] ss:$0 sm:$0xff] }
 0xf83   :  { %2686 = vrcp.f32 %v1243_v57 }
 0xf85   :  { %v1641_v59 = vpop.permute.xlu1 %1640 }
 0xf86   :  { %v1639_v61 = vpop.permute.xlu0 %1638  ;;  %v1657_v10 = vsel %vm242_vm0, %v3449_v30, %v1641_v59 }
 0xf87   :  { %v1656_v62 = vsel %vm242_vm0, %v3447_v28, %v1639_v61 }
 0xf89   :  { %v1645_v56 = vpop.permute.xlu1 %1644 }
 0xf8a   :  { %v1659_v0 = vsel %vm1658_vm3, %v1656_v62, %v1645_v56  ;;  %v1651_v58 = vpop.permute.xlu0 %1650 }
 0xf8b   :  { %v1662_v12 = vsel %vm1661_vm4, %v1659_v0, %v1651_v58 }
 0xf8c   :  { %v2685_v4 = vpop.eup %2684  ;;  %v1664_v28 = vadd.f32 %v1662_v12, %v1632_v5 }
 0xf8d   :  { %v2687_v6 = vpop.eup %2686  ;;  %v1249_v8 = vmul.f32 %v2685_v4, %v3511_v18  ;;  %v1647_v9 = vpop.permute.xlu1 %1646  ;;  %v1862_v18 = vld [vmem:[#allocation19 + $0x10] sm:$0xff] }
 0xf8e   :  { %v1247_v7 = vmul.f32 %v2687_v6, %v3518_v21  ;;  %v1660_v11 = vsel %vm1658_vm3, %v1657_v10, %v1647_v9  ;;  %v2566_v21 = vpack.c.bf16 %v1863_v20, %v1862_v18 }
 0xf90   :  { %2298 = vmatprep.mubr.f32.mxu0 %v1247_v7 }
 0xf91   :  { %2299 = vmatmul.mubr.f32.vlgmr.msra.gmra.mrb[6].mxu0 %v1249_v8  ;;  %v1653_v60 = vpop.permute.xlu1 %1652 }
 0xf92   :  { %2501 = vmatpush3.bf16.msra.mxu0 %v2498_v32  ;;  %2333 = vmatprep.mubr.f32.mxu0 %v1664_v28  ;;  %v1663_v13 = vsel %vm1661_vm4, %v1660_v11, %v1653_v60  ;;  %v2574_v32 = vpack.c.bf16 %v1867_v31, %v1866_v29 }
 0xf93   :  { %2503 = vmatprep.subr.bf16.mxu0 %v2502_v37  ;;  %v1665_v15 = vadd.f32 %v1663_v13, %v1635_v14 }
 0xf96   :  { %2505 = vmatpush3.bf16.msra.mxu0 %v2502_v37  ;;  %v1870_v37 = vld [vmem:[#allocation19 + $0x50] sm:$0xff] }
 0xf97   :  { %2507 = vmatprep.subr.bf16.mxu0 %v2506_v40 }
 0xf9a   :  { %2509 = vmatpush3.bf16.msra.mxu0 %v2506_v40  ;;  %v2582_v40 = vpack.c.bf16 %v1871_v39, %v1870_v37 }
 0xf9b   :  { %2511 = vmatprep.subr.bf16.mxu0 %v2510_v43 }
 0xf9e   :  { %2513 = vmatpush3.bf16.msra.mxu0 %v2510_v43  ;;  %v2586_v43 = vpack.c.bf16 %v1873_v42, %v1872_v41 }
 0xf9f   :  { %2515 = vmatprep.subr.bf16.mxu0 %v2514_v46 }
 0xfa2   :  { %2517 = vmatpush3.bf16.msra.mxu0 %v2514_v46  ;;  %v2590_v46 = vpack.c.bf16 %v1875_v45, %v1874_v44 }
 0xfa3   :  { %2519 = vmatprep.subr.bf16.mxu0 %v2518_v48 }
 0xfa6   :  { %2521 = vmatpush3.bf16.msra.mxu0 %v2518_v48 }
 0xfa7   :  { %2523 = vmatprep.subr.bf16.mxu0 %v2522_v50 }
 0xfaa   :  { %2525 = vmatpush3.bf16.msra.mxu0 %v2522_v50  ;;  %v2041_v50 = vld [vmem:[%s3598_s17] ss:$0 sm:$0xff] }
 0xfab   :  { %2527 = vmatprep.subr.bf16.mxu0 %v2526_v54 }
 0xfae   :  { %2529 = vmatpush3.bf16.msra.mxu0 %v2526_v54 }
 0xfaf   :  { %2563 = vmatprep.subr.bf16.mxu0 %v2562_v19 }
 0xfb1   :  { %2334 = vmatmul.mubr.f32.vlgmr.msra.gmra.mrb[8].mxu0 %v1665_v15 }
 0xfb2   :  { %2565 = vmatpush3.bf16.msra.mxu0 %v2562_v19 }
 0xfb3   :  { %2567 = vmatprep.subr.bf16.mxu0 %v2566_v21 }
 0xfb6   :  { %2569 = vmatpush3.bf16.msra.mxu0 %v2566_v21 }
 0xfb7   :  { %2571 = vmatprep.subr.bf16.mxu0 %v2570_v27 }
 0xfba   :  { %2573 = vmatpush3.bf16.msra.mxu0 %v2570_v27 }
 0xfbb   :  { %2575 = vmatprep.subr.bf16.mxu0 %v2574_v32 }
 0xfbe   :  { %2577 = vmatpush3.bf16.msra.mxu0 %v2574_v32 }
 0xfbf   :  { %2579 = vmatprep.subr.bf16.mxu0 %v2578_v38 }
 0xfc2   :  { %2581 = vmatpush3.bf16.msra.mxu0 %v2578_v38 }
 0xfc3   :  { %2583 = vmatprep.subr.bf16.mxu0 %v2582_v40 }
 0xfc6   :  { %2585 = vmatpush3.bf16.msra.mxu0 %v2582_v40 }
 0xfc7   :  { %2587 = vmatprep.subr.bf16.mxu0 %v2586_v43 }
 0xfca   :  { %2589 = vmatpush3.bf16.msra.mxu0 %v2586_v43 }
 0xfcb   :  { %2591 = vmatprep.subr.bf16.mxu0 %v2590_v46 }
 0xfce   :  { %2593 = vmatpush3.bf16.msra.mxu0 %v2590_v46 }
0x1064   :  { %v2300_v30 = vpop.f32.mrb[6].mxu0 }
0x1065   :  { %v1332_v22 = vpop.f32.mrb[7].mxu0 }
0x1084   :  { %v2335_v23 = vpop.f32.mrb[8].mxu0 }
0x1085   :  { %v1758_v2 = vsub.f32 %v1665_v15, %v2335_v23  ;;  %v1748_v24 = vpop.f32.mrb[9].mxu0 }
0x1086   :  { %v1757_v25 = vsub.f32 %v1664_v28, %v1748_v24 }
0x1087   :  { %v1760_v52 = vmul.f32 %v1758_v2, %v1758_v2 }
0x1088   :  { %v1759_v63 = vmul.f32 %v1757_v25, %v1757_v25 }
0x108a   :  { %2368 = vmatprep.mubr.f32.mxu1 %v1759_v63 }
0x108b   :  { %2369 = vmatmul.mubr.f32.vlgmr.msra.gmra.mrb[20].mxu1 %v1760_v52 }
0x115e   :  { %v2370_v47 = vpop.f32.mrb[20].mxu1 }
0x115f   :  { %v1833_v33 = vadd.f32 1e-07, %v2370_v47  ;;  %v1827_v48 = vpop.f32.mrb[21].mxu1 }
0x1160   :  { %v1828_v49 = vadd.f32 1e-07, %v1827_v48 }
0x1161   :  { %2688 = vrsqrt.f32 %v1833_v33 }
0x1162   :  { %2690 = vrsqrt.f32 %v1828_v49 }
0x116b   :  { %v2689_v34 = vpop.eup %2688 }
0x116c   :  { %v2691_v51 = vpop.eup %2690  ;;  %v1839_v53 = vmul.f32 %v2689_v34, %v1758_v2 }
0x116d   :  { %v1838_v54 = vmul.f32 %v2691_v51, %v1757_v25 }
0x116e   :  { %v1848_v57 = vmul.f32 %v2041_v50, %v1839_v53 }
0x116f   :  { %v1847_v59 = vmul.f32 %v2041_v50, %v1838_v54 }
0x1170   :  { %v1857_v61 = vadd.f32 %v2042_v55, %v1848_v57 }
0x1171   :  { %v1856_v62 = vadd.f32 %v2042_v55, %v1847_v59 }
0x1172   :  { %v1859_v56 = vmul.f32 %v2300_v30, %v1857_v61 }
0x1173   :  { %v1858_v0 = vmul.f32 %v1856_v62, %v1332_v22 }
0x1175   :  { %2403 = vmatprep.mubr.f32.mxu0 %v1858_v0 }
0x1176   :  { %2404 = vmatmul.mubr.f32.vlgmr.msra.gmra.mrb[10].mxu0 %v1859_v56 }
0x1177   :  { %2945 = shalt.err (!%p2942_p8)
}
0x1178   :  { %s3632_s30 = sld [smem:[#allocation40_spill]] }
0x117e   :  { %s2946_s1 = scalar_lea.hbm %s3632_s30, 256 }
0x117f   :  { %p2947_p9 = scmp.ne.s32.totalorder %s3632_s30, %s2946_s1  ;;  %p2950_p10 = scmp.lt.u32.totalorder %s2946_s1, %s3632_s30 }
0x1181   :  { %p2952_p11 = pnand %p2950_p10, %p2947_p9 }
0x1183   :  { %2955 = shalt.err (!%p2952_p11)
}
0x1184   :  { %1976 = dma.vmem_to_hbm [thread:$0]  %s1971_s24, 256, %s3632_s30, [#allocation22], %s2996_s3, %s2996_s3, %s2997_s0  }
0x1185   :  { %s3015_s19 = smov [#allocation20]  }
0x1186   :  { %s1958_s25 = sshll.u32 %s3015_s19, 4  ;;  %s1959_s25 = int_to_ptr.vmem [resolvable:$true] %s1958_s25 }
0x1187   :  { %s2956_s21 = scalar_lea.vmem %s1959_s25, 256  ;;  %p2961_p13 = scmp.lt.s32.totalorder %s1959_s25, %s1959_s25 }
0x1188   :  { %p2957_p12 = scmp.ne.s32.totalorder %s1959_s25, %s2956_s21  ;;  %p2962_p0 = scmp.lt.s32.totalorder %s2956_s21, %s2956_s21 }
0x118a   :  { %p2963_p1 = por %p2962_p0, %p2961_p13 }
0x118c   :  { %p2964_p2 = pnand %p2963_p1, %p2957_p12 }
0x1249   :  { %v2405_v58 = vpop.f32.mrb[10].mxu0 }
0x124a   :  { %1952 = vst [vmem:[#allocation20 + $0x8] sm:$0xff] %v2405_v58  ;;  %v1942_v1 = vpop.f32.mrb[11].mxu0 }
0x124b   :  { %1951 = vst [vmem:[#allocation20] sm:$0xff] %v1942_v1 }
0x124c   :  { %2967 = shalt.err (!%p2964_p2)
}
0x124d   :  { %s3633_s26 = sld [smem:[#allocation39_spill]] }
0x1253   :  { %s2968_s10 = scalar_lea.hbm %s3633_s26, 256 }
0x1254   :  { %p2969_p3 = scmp.ne.s32.totalorder %s3633_s26, %s2968_s10  ;;  %p2972_p4 = scmp.lt.u32.totalorder %s2968_s10, %s3633_s26 }
0x1256   :  { %p2974_p5 = pnand %p2972_p4, %p2969_p3 }
0x1258   :  { %2977 = shalt.err (!%p2974_p5)
}
0x1259   :  { %1964 = dma.vmem_to_hbm [thread:$0]  %s1959_s25, 256, %s3633_s26, [#allocation4], %s2996_s3, %s2996_s3, %s2997_s0  }
0x125a   :  { %2990 = dma.done.wait [#allocation4], 256  }
0x125b   :  { %2991 = vsyncadd [#allocation4], 4294967040 }
0x125c   :  { %2992 = dma.done.wait [#allocation22], 256  }
0x125d   :  { %2993 = vsyncadd [#allocation22], 4294967040 }
0x125e   :  { %1983 = vsyncpa [#allocation3], 1 }
0x125f   :  { %1984 = vsyncpa [#allocation6], 1 }
0x1260   :  { %1985 = vsyncpa [#allocation9], 1 }
0x1261   :  { %1986 = vsyncpa [#allocation12], 1 }
0x1262   :  { %1987 = vsyncpa [#allocation15], 1 }
0x1263   :  { %1988 = vsyncpa [#allocation18], 1 }
0x1264   :  { %1989 = vsyncpa [#allocation4], 1 }
0x1265   :  { %1990 = vsyncpa [#allocation22], 1 }

</bundles_post_ra>
